<compile_context>
chip_gen: v6e
topology: v6e:2x2x1
jax: 0.10.0
libtpu: 0.0.40
codegen_flags: <defaults>
</compile_context>

<pallas_src>
import functools

import jax
import jax.numpy as jnp
from jax import lax
from jax.experimental import pallas as pl
from jax.experimental.pallas import tpu as pltpu


def _ssim_kernel(dr_ref, x_ref, y_ref, ssum_ref,
                 *, win_size, k1, k2, hout, wout):
    x = x_ref[...].astype(jnp.float32)          # (TB, H, W)
    y = y_ref[...].astype(jnp.float32)          # (TB, H, W)
    dr = dr_ref[...]                            # (TB, 1, 1) f32 per-sample range

    np_ = float(win_size * win_size)
    inv_np = 1.0 / np_
    cov_norm = np_ / (np_ - 1.0)

    c1 = (k1 * dr) * (k1 * dr)                  # (TB, 1, 1), broadcasts below
    c2 = (k2 * dr) * (k2 * dr)

    def box_mean(img):
        # Separable "valid" win_size x win_size mean: lane pass then sublane
        # pass, each a handful of shifted-slice adds (static slices, unrolled).
        acc = img[:, :, 0:wout]
        for d in range(1, win_size):
            acc = acc + img[:, :, d:d + wout]   # (TB, H, Wout)
        out = acc[:, 0:hout, :]
        for d in range(1, win_size):
            out = out + acc[:, d:d + hout, :]   # (TB, Hout, Wout)
        return out * inv_np

    ux = box_mean(x)
    uy = box_mean(y)
    uxx = box_mean(x * x)
    uyy = box_mean(y * y)
    uxy = box_mean(x * y)

    vx = cov_norm * (uxx - ux * ux)
    vy = cov_norm * (uyy - uy * uy)
    vxy = cov_norm * (uxy - ux * uy)

    a1 = 2.0 * ux * uy + c1
    a2 = 2.0 * vxy + c2
    b1 = ux * ux + uy * uy + c1
    b2 = vx + vy + c2
    s = (a1 * a2) / (b1 * b2)                   # (TB, Hout, Wout) SSIM map

    # Per-sample reduction (lanes, then sublanes) -> (TB, 1, 1).
    ssum_ref[...] = jnp.sum(jnp.sum(s, axis=2, keepdims=True),
                            axis=1, keepdims=True)


def _pick_tb(n, h, w, budget_bytes=8 << 20):
    """Largest batch-block size that divides n and fits a conservative VMEM budget."""
    # Rough per-sample live f32 footprint inside the kernel (inputs, products,
    # 5 box-filter maps, SSIM intermediates) plus double-buffered input DMA.
    per_sample = 16 * h * w * 4
    cap = int(max(1, min(n, budget_bytes // max(per_sample, 1), 8)))
    for tb in range(cap, 0, -1):
        if n % tb == 0:
            return tb
    return 1


def ssim_loss(X, Y, data_range, *, win_size: int = 7,
              k1: float = 0.01, k2: float = 0.03):
    """1 - mean(SSIM).  X, Y: (N, 1, H, W); data_range: (N,)."""
    N, C, H, W = X.shape
    assert C == 1, "SSIMLoss conv weight has in_channels == 1"
    Hout, Wout = H - win_size + 1, W - win_size + 1

    x = X[:, 0]                                  # (N, H, W), native dtype
    y = Y[:, 0]
    dr = data_range.astype(jnp.float32).reshape(N, 1, 1)

    TB = _pick_tb(N, H, W)
    grid = (N // TB,)

    kernel = functools.partial(_ssim_kernel, win_size=win_size, k1=k1, k2=k2,
                               hout=Hout, wout=Wout)

    per_sample_sums = pl.pallas_call(
        kernel,
        out_shape=jax.ShapeDtypeStruct((N, 1, 1), jnp.float32),
        grid_spec=pltpu.PrefetchScalarGridSpec(
            num_scalar_prefetch=0,
            grid=grid,
            in_specs=[
                pl.BlockSpec((TB, 1, 1), lambda b: (b, 0, 0)),   # data_range
                pl.BlockSpec((TB, H, W), lambda b: (b, 0, 0)),   # x
                pl.BlockSpec((TB, H, W), lambda b: (b, 0, 0)),   # y
            ],
            out_specs=pl.BlockSpec((TB, 1, 1), lambda b: (b, 0, 0)),
        ),
        compiler_params=pltpu.CompilerParams(
            dimension_semantics=("parallel",)),   # batch steps are independent
    )(dr, x, y)

    # Final scalar glue: mean over all (N, 1, Hout, Wout) SSIM values.
    return 1.0 - jnp.sum(per_sample_sums) / (N * C * Hout * Wout)


def ssim_loss_ref(X, Y, data_range, *, win_size=7, k1=0.01, k2=0.03):
    """Pure-JAX reference mirroring the PyTorch module."""
    w = jnp.ones((1, 1, win_size, win_size), jnp.float32) / (win_size ** 2)
    conv = lambda a: lax.conv_general_dilated(
        a.astype(jnp.float32), w, (1, 1), "VALID",
        dimension_numbers=("NCHW", "OIHW", "NCHW"))
    dr = data_range[:, None, None, None].astype(jnp.float32)
    C1 = (k1 * dr) ** 2
    C2 = (k2 * dr) ** 2
    ux, uy = conv(X), conv(Y)
    uxx, uyy, uxy = conv(X * X), conv(Y * Y), conv(X * Y)
    NP = win_size ** 2
    cov_norm = NP / (NP - 1)
    vx = cov_norm * (uxx - ux * ux)
    vy = cov_norm * (uyy - uy * uy)
    vxy = cov_norm * (uxy - ux * uy)
    A1, A2 = 2 * ux * uy + C1, 2 * vxy + C2
    B1, B2 = ux ** 2 + uy ** 2 + C1, vx + vy + C2
    S = A1 * A2 / (B1 * B2)
    return 1.0 - S.mean()


if __name__ == "__main__":
    key = jax.random.PRNGKey(0)
    kx, ky, kd = jax.random.split(key, 3)

    N, C, H, W = 2, 1, 16, 16
    X = jax.random.normal(kx, (N, C, H, W), dtype=jnp.float32)
    Y = jax.random.normal(ky, (N, C, H, W), dtype=jnp.float32)
    data_range = jax.random.uniform(kd, (N,), dtype=jnp.float32,
                                    minval=0.5, maxval=1.5)

    loss = jax.block_until_ready(ssim_loss(X, Y, data_range))
    ref = jax.block_until_ready(ssim_loss_ref(X, Y, data_range))

    if not jnp.allclose(loss, ref, rtol=1e-4, atol=1e-4):
        raise AssertionError(f"mismatch: pallas={loss} ref={ref}")
    print("KERNEL_OK")
</pallas_src>

<mosaic_0001>
module attributes {stable_mosaic.version = 11 : i64} {
  func.func @_ssim_kernel(%arg0: i32, %arg1: memref<2x1x1xf32, #tpu.memory_space<vmem>>, %arg2: memref<2x16x16xf32, #tpu.memory_space<vmem>>, %arg3: memref<2x16x16xf32, #tpu.memory_space<vmem>>, %arg4: memref<2x1x1xf32, #tpu.memory_space<vmem>>) attributes {dimension_semantics = [#tpu.dimension_semantics<parallel>], iteration_bounds = array<i64: 1>, scalar_prefetch = 0 : i64, scratch_operands = 0 : i64, tpu.core_type = #tpu.core_type<tc>, window_params = [{transform_indices = @transform_0, window_bounds = array<i64: 2, 1, 1>}, {transform_indices = @transform_1, window_bounds = array<i64: 2, 16, 16>}, {transform_indices = @transform_2, window_bounds = array<i64: 2, 16, 16>}, {transform_indices = @transform_3, window_bounds = array<i64: 2, 1, 1>}]} {
    %c0 = arith.constant 0 : index
    %c0_0 = arith.constant 0 : index
    %c0_1 = arith.constant 0 : index
    %0 = vector.load %arg2[%c0, %c0_0, %c0_1] : memref<2x16x16xf32, #tpu.memory_space<vmem>>, vector<2x16x16xf32>
    %c0_2 = arith.constant 0 : index
    %c0_3 = arith.constant 0 : index
    %c0_4 = arith.constant 0 : index
    %1 = vector.load %arg3[%c0_2, %c0_3, %c0_4] : memref<2x16x16xf32, #tpu.memory_space<vmem>>, vector<2x16x16xf32>
    %c0_5 = arith.constant 0 : index
    %c0_6 = arith.constant 0 : index
    %c0_7 = arith.constant 0 : index
    %2 = vector.load %arg1[%c0_5, %c0_6, %c0_7] : memref<2x1x1xf32, #tpu.memory_space<vmem>>, vector<2x1x1xf32>
    %cst = arith.constant 0.00999999977 : f32
    %3 = vector.broadcast %cst : f32 to vector<2x1x1xf32>
    %4 = arith.mulf %3, %2 : vector<2x1x1xf32>
    %cst_8 = arith.constant 0.00999999977 : f32
    %5 = vector.broadcast %cst_8 : f32 to vector<2x1x1xf32>
    %6 = arith.mulf %5, %2 : vector<2x1x1xf32>
    %7 = arith.mulf %4, %6 : vector<2x1x1xf32>
    %cst_9 = arith.constant 3.000000e-02 : f32
    %8 = vector.broadcast %cst_9 : f32 to vector<2x1x1xf32>
    %9 = arith.mulf %8, %2 : vector<2x1x1xf32>
    %cst_10 = arith.constant 3.000000e-02 : f32
    %10 = vector.broadcast %cst_10 : f32 to vector<2x1x1xf32>
    %11 = arith.mulf %10, %2 : vector<2x1x1xf32>
    %12 = arith.mulf %9, %11 : vector<2x1x1xf32>
    %13 = vector.extract_strided_slice %0 {offsets = [0, 0, 0], sizes = [2, 16, 10], strides = [1, 1, 1]} : vector<2x16x16xf32> to vector<2x16x10xf32>
    %14 = vector.extract_strided_slice %0 {offsets = [0, 0, 1], sizes = [2, 16, 10], strides = [1, 1, 1]} : vector<2x16x16xf32> to vector<2x16x10xf32>
    %15 = arith.addf %13, %14 : vector<2x16x10xf32>
    %16 = vector.extract_strided_slice %0 {offsets = [0, 0, 2], sizes = [2, 16, 10], strides = [1, 1, 1]} : vector<2x16x16xf32> to vector<2x16x10xf32>
    %17 = arith.addf %15, %16 : vector<2x16x10xf32>
    %18 = vector.extract_strided_slice %0 {offsets = [0, 0, 3], sizes = [2, 16, 10], strides = [1, 1, 1]} : vector<2x16x16xf32> to vector<2x16x10xf32>
    %19 = arith.addf %17, %18 : vector<2x16x10xf32>
    %20 = vector.extract_strided_slice %0 {offsets = [0, 0, 4], sizes = [2, 16, 10], strides = [1, 1, 1]} : vector<2x16x16xf32> to vector<2x16x10xf32>
    %21 = arith.addf %19, %20 : vector<2x16x10xf32>
    %22 = vector.extract_strided_slice %0 {offsets = [0, 0, 5], sizes = [2, 16, 10], strides = [1, 1, 1]} : vector<2x16x16xf32> to vector<2x16x10xf32>
    %23 = arith.addf %21, %22 : vector<2x16x10xf32>
    %24 = vector.extract_strided_slice %0 {offsets = [0, 0, 6], sizes = [2, 16, 10], strides = [1, 1, 1]} : vector<2x16x16xf32> to vector<2x16x10xf32>
    %25 = arith.addf %23, %24 : vector<2x16x10xf32>
    %26 = vector.extract_strided_slice %25 {offsets = [0, 0, 0], sizes = [2, 10, 10], strides = [1, 1, 1]} : vector<2x16x10xf32> to vector<2x10x10xf32>
    %27 = vector.extract_strided_slice %25 {offsets = [0, 1, 0], sizes = [2, 10, 10], strides = [1, 1, 1]} : vector<2x16x10xf32> to vector<2x10x10xf32>
    %28 = arith.addf %26, %27 : vector<2x10x10xf32>
    %29 = vector.extract_strided_slice %25 {offsets = [0, 2, 0], sizes = [2, 10, 10], strides = [1, 1, 1]} : vector<2x16x10xf32> to vector<2x10x10xf32>
    %30 = arith.addf %28, %29 : vector<2x10x10xf32>
    %31 = vector.extract_strided_slice %25 {offsets = [0, 3, 0], sizes = [2, 10, 10], strides = [1, 1, 1]} : vector<2x16x10xf32> to vector<2x10x10xf32>
    %32 = arith.addf %30, %31 : vector<2x10x10xf32>
    %33 = vector.extract_strided_slice %25 {offsets = [0, 4, 0], sizes = [2, 10, 10], strides = [1, 1, 1]} : vector<2x16x10xf32> to vector<2x10x10xf32>
    %34 = arith.addf %32, %33 : vector<2x10x10xf32>
    %35 = vector.extract_strided_slice %25 {offsets = [0, 5, 0], sizes = [2, 10, 10], strides = [1, 1, 1]} : vector<2x16x10xf32> to vector<2x10x10xf32>
    %36 = arith.addf %34, %35 : vector<2x10x10xf32>
    %37 = vector.extract_strided_slice %25 {offsets = [0, 6, 0], sizes = [2, 10, 10], strides = [1, 1, 1]} : vector<2x16x10xf32> to vector<2x10x10xf32>
    %38 = arith.addf %36, %37 : vector<2x10x10xf32>
    %cst_11 = arith.constant 0.0204081628 : f32
    %39 = vector.broadcast %cst_11 : f32 to vector<2x10x10xf32>
    %40 = arith.mulf %38, %39 : vector<2x10x10xf32>
    %41 = vector.extract_strided_slice %1 {offsets = [0, 0, 0], sizes = [2, 16, 10], strides = [1, 1, 1]} : vector<2x16x16xf32> to vector<2x16x10xf32>
    %42 = vector.extract_strided_slice %1 {offsets = [0, 0, 1], sizes = [2, 16, 10], strides = [1, 1, 1]} : vector<2x16x16xf32> to vector<2x16x10xf32>
    %43 = arith.addf %41, %42 : vector<2x16x10xf32>
    %44 = vector.extract_strided_slice %1 {offsets = [0, 0, 2], sizes = [2, 16, 10], strides = [1, 1, 1]} : vector<2x16x16xf32> to vector<2x16x10xf32>
    %45 = arith.addf %43, %44 : vector<2x16x10xf32>
    %46 = vector.extract_strided_slice %1 {offsets = [0, 0, 3], sizes = [2, 16, 10], strides = [1, 1, 1]} : vector<2x16x16xf32> to vector<2x16x10xf32>
    %47 = arith.addf %45, %46 : vector<2x16x10xf32>
    %48 = vector.extract_strided_slice %1 {offsets = [0, 0, 4], sizes = [2, 16, 10], strides = [1, 1, 1]} : vector<2x16x16xf32> to vector<2x16x10xf32>
    %49 = arith.addf %47, %48 : vector<2x16x10xf32>
    %50 = vector.extract_strided_slice %1 {offsets = [0, 0, 5], sizes = [2, 16, 10], strides = [1, 1, 1]} : vector<2x16x16xf32> to vector<2x16x10xf32>
    %51 = arith.addf %49, %50 : vector<2x16x10xf32>
    %52 = vector.extract_strided_slice %1 {offsets = [0, 0, 6], sizes = [2, 16, 10], strides = [1, 1, 1]} : vector<2x16x16xf32> to vector<2x16x10xf32>
    %53 = arith.addf %51, %52 : vector<2x16x10xf32>
    %54 = vector.extract_strided_slice %53 {offsets = [0, 0, 0], sizes = [2, 10, 10], strides = [1, 1, 1]} : vector<2x16x10xf32> to vector<2x10x10xf32>
    %55 = vector.extract_strided_slice %53 {offsets = [0, 1, 0], sizes = [2, 10, 10], strides = [1, 1, 1]} : vector<2x16x10xf32> to vector<2x10x10xf32>
    %56 = arith.addf %54, %55 : vector<2x10x10xf32>
    %57 = vector.extract_strided_slice %53 {offsets = [0, 2, 0], sizes = [2, 10, 10], strides = [1, 1, 1]} : vector<2x16x10xf32> to vector<2x10x10xf32>
    %58 = arith.addf %56, %57 : vector<2x10x10xf32>
    %59 = vector.extract_strided_slice %53 {offsets = [0, 3, 0], sizes = [2, 10, 10], strides = [1, 1, 1]} : vector<2x16x10xf32> to vector<2x10x10xf32>
    %60 = arith.addf %58, %59 : vector<2x10x10xf32>
    %61 = vector.extract_strided_slice %53 {offsets = [0, 4, 0], sizes = [2, 10, 10], strides = [1, 1, 1]} : vector<2x16x10xf32> to vector<2x10x10xf32>
    %62 = arith.addf %60, %61 : vector<2x10x10xf32>
    %63 = vector.extract_strided_slice %53 {offsets = [0, 5, 0], sizes = [2, 10, 10], strides = [1, 1, 1]} : vector<2x16x10xf32> to vector<2x10x10xf32>
    %64 = arith.addf %62, %63 : vector<2x10x10xf32>
    %65 = vector.extract_strided_slice %53 {offsets = [0, 6, 0], sizes = [2, 10, 10], strides = [1, 1, 1]} : vector<2x16x10xf32> to vector<2x10x10xf32>
    %66 = arith.addf %64, %65 : vector<2x10x10xf32>
    %cst_12 = arith.constant 0.0204081628 : f32
    %67 = vector.broadcast %cst_12 : f32 to vector<2x10x10xf32>
    %68 = arith.mulf %66, %67 : vector<2x10x10xf32>
    %69 = arith.mulf %0, %0 : vector<2x16x16xf32>
    %70 = vector.extract_strided_slice %69 {offsets = [0, 0, 0], sizes = [2, 16, 10], strides = [1, 1, 1]} : vector<2x16x16xf32> to vector<2x16x10xf32>
    %71 = vector.extract_strided_slice %69 {offsets = [0, 0, 1], sizes = [2, 16, 10], strides = [1, 1, 1]} : vector<2x16x16xf32> to vector<2x16x10xf32>
    %72 = arith.addf %70, %71 : vector<2x16x10xf32>
    %73 = vector.extract_strided_slice %69 {offsets = [0, 0, 2], sizes = [2, 16, 10], strides = [1, 1, 1]} : vector<2x16x16xf32> to vector<2x16x10xf32>
    %74 = arith.addf %72, %73 : vector<2x16x10xf32>
    %75 = vector.extract_strided_slice %69 {offsets = [0, 0, 3], sizes = [2, 16, 10], strides = [1, 1, 1]} : vector<2x16x16xf32> to vector<2x16x10xf32>
    %76 = arith.addf %74, %75 : vector<2x16x10xf32>
    %77 = vector.extract_strided_slice %69 {offsets = [0, 0, 4], sizes = [2, 16, 10], strides = [1, 1, 1]} : vector<2x16x16xf32> to vector<2x16x10xf32>
    %78 = arith.addf %76, %77 : vector<2x16x10xf32>
    %79 = vector.extract_strided_slice %69 {offsets = [0, 0, 5], sizes = [2, 16, 10], strides = [1, 1, 1]} : vector<2x16x16xf32> to vector<2x16x10xf32>
    %80 = arith.addf %78, %79 : vector<2x16x10xf32>
    %81 = vector.extract_strided_slice %69 {offsets = [0, 0, 6], sizes = [2, 16, 10], strides = [1, 1, 1]} : vector<2x16x16xf32> to vector<2x16x10xf32>
    %82 = arith.addf %80, %81 : vector<2x16x10xf32>
    %83 = vector.extract_strided_slice %82 {offsets = [0, 0, 0], sizes = [2, 10, 10], strides = [1, 1, 1]} : vector<2x16x10xf32> to vector<2x10x10xf32>
    %84 = vector.extract_strided_slice %82 {offsets = [0, 1, 0], sizes = [2, 10, 10], strides = [1, 1, 1]} : vector<2x16x10xf32> to vector<2x10x10xf32>
    %85 = arith.addf %83, %84 : vector<2x10x10xf32>
    %86 = vector.extract_strided_slice %82 {offsets = [0, 2, 0], sizes = [2, 10, 10], strides = [1, 1, 1]} : vector<2x16x10xf32> to vector<2x10x10xf32>
    %87 = arith.addf %85, %86 : vector<2x10x10xf32>
    %88 = vector.extract_strided_slice %82 {offsets = [0, 3, 0], sizes = [2, 10, 10], strides = [1, 1, 1]} : vector<2x16x10xf32> to vector<2x10x10xf32>
    %89 = arith.addf %87, %88 : vector<2x10x10xf32>
    %90 = vector.extract_strided_slice %82 {offsets = [0, 4, 0], sizes = [2, 10, 10], strides = [1, 1, 1]} : vector<2x16x10xf32> to vector<2x10x10xf32>
    %91 = arith.addf %89, %90 : vector<2x10x10xf32>
    %92 = vector.extract_strided_slice %82 {offsets = [0, 5, 0], sizes = [2, 10, 10], strides = [1, 1, 1]} : vector<2x16x10xf32> to vector<2x10x10xf32>
    %93 = arith.addf %91, %92 : vector<2x10x10xf32>
    %94 = vector.extract_strided_slice %82 {offsets = [0, 6, 0], sizes = [2, 10, 10], strides = [1, 1, 1]} : vector<2x16x10xf32> to vector<2x10x10xf32>
    %95 = arith.addf %93, %94 : vector<2x10x10xf32>
    %cst_13 = arith.constant 0.0204081628 : f32
    %96 = vector.broadcast %cst_13 : f32 to vector<2x10x10xf32>
    %97 = arith.mulf %95, %96 : vector<2x10x10xf32>
    %98 = arith.mulf %1, %1 : vector<2x16x16xf32>
    %99 = vector.extract_strided_slice %98 {offsets = [0, 0, 0], sizes = [2, 16, 10], strides = [1, 1, 1]} : vector<2x16x16xf32> to vector<2x16x10xf32>
    %100 = vector.extract_strided_slice %98 {offsets = [0, 0, 1], sizes = [2, 16, 10], strides = [1, 1, 1]} : vector<2x16x16xf32> to vector<2x16x10xf32>
    %101 = arith.addf %99, %100 : vector<2x16x10xf32>
    %102 = vector.extract_strided_slice %98 {offsets = [0, 0, 2], sizes = [2, 16, 10], strides = [1, 1, 1]} : vector<2x16x16xf32> to vector<2x16x10xf32>
    %103 = arith.addf %101, %102 : vector<2x16x10xf32>
    %104 = vector.extract_strided_slice %98 {offsets = [0, 0, 3], sizes = [2, 16, 10], strides = [1, 1, 1]} : vector<2x16x16xf32> to vector<2x16x10xf32>
    %105 = arith.addf %103, %104 : vector<2x16x10xf32>
    %106 = vector.extract_strided_slice %98 {offsets = [0, 0, 4], sizes = [2, 16, 10], strides = [1, 1, 1]} : vector<2x16x16xf32> to vector<2x16x10xf32>
    %107 = arith.addf %105, %106 : vector<2x16x10xf32>
    %108 = vector.extract_strided_slice %98 {offsets = [0, 0, 5], sizes = [2, 16, 10], strides = [1, 1, 1]} : vector<2x16x16xf32> to vector<2x16x10xf32>
    %109 = arith.addf %107, %108 : vector<2x16x10xf32>
    %110 = vector.extract_strided_slice %98 {offsets = [0, 0, 6], sizes = [2, 16, 10], strides = [1, 1, 1]} : vector<2x16x16xf32> to vector<2x16x10xf32>
    %111 = arith.addf %109, %110 : vector<2x16x10xf32>
    %112 = vector.extract_strided_slice %111 {offsets = [0, 0, 0], sizes = [2, 10, 10], strides = [1, 1, 1]} : vector<2x16x10xf32> to vector<2x10x10xf32>
    %113 = vector.extract_strided_slice %111 {offsets = [0, 1, 0], sizes = [2, 10, 10], strides = [1, 1, 1]} : vector<2x16x10xf32> to vector<2x10x10xf32>
    %114 = arith.addf %112, %113 : vector<2x10x10xf32>
    %115 = vector.extract_strided_slice %111 {offsets = [0, 2, 0], sizes = [2, 10, 10], strides = [1, 1, 1]} : vector<2x16x10xf32> to vector<2x10x10xf32>
    %116 = arith.addf %114, %115 : vector<2x10x10xf32>
    %117 = vector.extract_strided_slice %111 {offsets = [0, 3, 0], sizes = [2, 10, 10], strides = [1, 1, 1]} : vector<2x16x10xf32> to vector<2x10x10xf32>
    %118 = arith.addf %116, %117 : vector<2x10x10xf32>
    %119 = vector.extract_strided_slice %111 {offsets = [0, 4, 0], sizes = [2, 10, 10], strides = [1, 1, 1]} : vector<2x16x10xf32> to vector<2x10x10xf32>
    %120 = arith.addf %118, %119 : vector<2x10x10xf32>
    %121 = vector.extract_strided_slice %111 {offsets = [0, 5, 0], sizes = [2, 10, 10], strides = [1, 1, 1]} : vector<2x16x10xf32> to vector<2x10x10xf32>
    %122 = arith.addf %120, %121 : vector<2x10x10xf32>
    %123 = vector.extract_strided_slice %111 {offsets = [0, 6, 0], sizes = [2, 10, 10], strides = [1, 1, 1]} : vector<2x16x10xf32> to vector<2x10x10xf32>
    %124 = arith.addf %122, %123 : vector<2x10x10xf32>
    %cst_14 = arith.constant 0.0204081628 : f32
    %125 = vector.broadcast %cst_14 : f32 to vector<2x10x10xf32>
    %126 = arith.mulf %124, %125 : vector<2x10x10xf32>
    %127 = arith.mulf %0, %1 : vector<2x16x16xf32>
    %128 = vector.extract_strided_slice %127 {offsets = [0, 0, 0], sizes = [2, 16, 10], strides = [1, 1, 1]} : vector<2x16x16xf32> to vector<2x16x10xf32>
    %129 = vector.extract_strided_slice %127 {offsets = [0, 0, 1], sizes = [2, 16, 10], strides = [1, 1, 1]} : vector<2x16x16xf32> to vector<2x16x10xf32>
    %130 = arith.addf %128, %129 : vector<2x16x10xf32>
    %131 = vector.extract_strided_slice %127 {offsets = [0, 0, 2], sizes = [2, 16, 10], strides = [1, 1, 1]} : vector<2x16x16xf32> to vector<2x16x10xf32>
    %132 = arith.addf %130, %131 : vector<2x16x10xf32>
    %133 = vector.extract_strided_slice %127 {offsets = [0, 0, 3], sizes = [2, 16, 10], strides = [1, 1, 1]} : vector<2x16x16xf32> to vector<2x16x10xf32>
    %134 = arith.addf %132, %133 : vector<2x16x10xf32>
    %135 = vector.extract_strided_slice %127 {offsets = [0, 0, 4], sizes = [2, 16, 10], strides = [1, 1, 1]} : vector<2x16x16xf32> to vector<2x16x10xf32>
    %136 = arith.addf %134, %135 : vector<2x16x10xf32>
    %137 = vector.extract_strided_slice %127 {offsets = [0, 0, 5], sizes = [2, 16, 10], strides = [1, 1, 1]} : vector<2x16x16xf32> to vector<2x16x10xf32>
    %138 = arith.addf %136, %137 : vector<2x16x10xf32>
    %139 = vector.extract_strided_slice %127 {offsets = [0, 0, 6], sizes = [2, 16, 10], strides = [1, 1, 1]} : vector<2x16x16xf32> to vector<2x16x10xf32>
    %140 = arith.addf %138, %139 : vector<2x16x10xf32>
    %141 = vector.extract_strided_slice %140 {offsets = [0, 0, 0], sizes = [2, 10, 10], strides = [1, 1, 1]} : vector<2x16x10xf32> to vector<2x10x10xf32>
    %142 = vector.extract_strided_slice %140 {offsets = [0, 1, 0], sizes = [2, 10, 10], strides = [1, 1, 1]} : vector<2x16x10xf32> to vector<2x10x10xf32>
    %143 = arith.addf %141, %142 : vector<2x10x10xf32>
    %144 = vector.extract_strided_slice %140 {offsets = [0, 2, 0], sizes = [2, 10, 10], strides = [1, 1, 1]} : vector<2x16x10xf32> to vector<2x10x10xf32>
    %145 = arith.addf %143, %144 : vector<2x10x10xf32>
    %146 = vector.extract_strided_slice %140 {offsets = [0, 3, 0], sizes = [2, 10, 10], strides = [1, 1, 1]} : vector<2x16x10xf32> to vector<2x10x10xf32>
    %147 = arith.addf %145, %146 : vector<2x10x10xf32>
    %148 = vector.extract_strided_slice %140 {offsets = [0, 4, 0], sizes = [2, 10, 10], strides = [1, 1, 1]} : vector<2x16x10xf32> to vector<2x10x10xf32>
    %149 = arith.addf %147, %148 : vector<2x10x10xf32>
    %150 = vector.extract_strided_slice %140 {offsets = [0, 5, 0], sizes = [2, 10, 10], strides = [1, 1, 1]} : vector<2x16x10xf32> to vector<2x10x10xf32>
    %151 = arith.addf %149, %150 : vector<2x10x10xf32>
    %152 = vector.extract_strided_slice %140 {offsets = [0, 6, 0], sizes = [2, 10, 10], strides = [1, 1, 1]} : vector<2x16x10xf32> to vector<2x10x10xf32>
    %153 = arith.addf %151, %152 : vector<2x10x10xf32>
    %cst_15 = arith.constant 0.0204081628 : f32
    %154 = vector.broadcast %cst_15 : f32 to vector<2x10x10xf32>
    %155 = arith.mulf %153, %154 : vector<2x10x10xf32>
    %156 = arith.mulf %40, %40 : vector<2x10x10xf32>
    %157 = arith.subf %97, %156 : vector<2x10x10xf32>
    %cst_16 = arith.constant 1.02083337 : f32
    %158 = vector.broadcast %cst_16 : f32 to vector<2x10x10xf32>
    %159 = arith.mulf %158, %157 : vector<2x10x10xf32>
    %160 = arith.mulf %68, %68 : vector<2x10x10xf32>
    %161 = arith.subf %126, %160 : vector<2x10x10xf32>
    %cst_17 = arith.constant 1.02083337 : f32
    %162 = vector.broadcast %cst_17 : f32 to vector<2x10x10xf32>
    %163 = arith.mulf %162, %161 : vector<2x10x10xf32>
    %164 = arith.mulf %40, %68 : vector<2x10x10xf32>
    %165 = arith.subf %155, %164 : vector<2x10x10xf32>
    %cst_18 = arith.constant 1.02083337 : f32
    %166 = vector.broadcast %cst_18 : f32 to vector<2x10x10xf32>
    %167 = arith.mulf %166, %165 : vector<2x10x10xf32>
    %cst_19 = arith.constant 2.000000e+00 : f32
    %168 = vector.broadcast %cst_19 : f32 to vector<2x10x10xf32>
    %169 = arith.mulf %168, %40 : vector<2x10x10xf32>
    %170 = arith.mulf %169, %68 : vector<2x10x10xf32>
    %171 = vector.broadcast %7 : vector<2x1x1xf32> to vector<2x10x10xf32>
    %172 = arith.addf %170, %171 : vector<2x10x10xf32>
    %cst_20 = arith.constant 2.000000e+00 : f32
    %173 = vector.broadcast %cst_20 : f32 to vector<2x10x10xf32>
    %174 = arith.mulf %173, %167 : vector<2x10x10xf32>
    %175 = vector.broadcast %12 : vector<2x1x1xf32> to vector<2x10x10xf32>
    %176 = arith.addf %174, %175 : vector<2x10x10xf32>
    %177 = arith.mulf %40, %40 : vector<2x10x10xf32>
    %178 = arith.mulf %68, %68 : vector<2x10x10xf32>
    %179 = arith.addf %177, %178 : vector<2x10x10xf32>
    %180 = vector.broadcast %7 : vector<2x1x1xf32> to vector<2x10x10xf32>
    %181 = arith.addf %179, %180 : vector<2x10x10xf32>
    %182 = arith.addf %159, %163 : vector<2x10x10xf32>
    %183 = vector.broadcast %12 : vector<2x1x1xf32> to vector<2x10x10xf32>
    %184 = arith.addf %182, %183 : vector<2x10x10xf32>
    %185 = arith.mulf %172, %176 : vector<2x10x10xf32>
    %186 = arith.mulf %181, %184 : vector<2x10x10xf32>
    %187 = arith.divf %185, %186 : vector<2x10x10xf32>
    %cst_21 = arith.constant dense<0.000000e+00> : vector<2x10xf32>
    %188 = vector.multi_reduction <add>, %187, %cst_21 [2] : vector<2x10x10xf32> to vector<2x10xf32>
    %189 = vector.shape_cast %188 : vector<2x10xf32> to vector<2x10x1xf32>
    %cst_22 = arith.constant dense<0.000000e+00> : vector<2x1xf32>
    %190 = vector.multi_reduction <add>, %189, %cst_22 [1] : vector<2x10x1xf32> to vector<2x1xf32>
    %191 = vector.shape_cast %190 : vector<2x1xf32> to vector<2x1x1xf32>
    %c0_23 = arith.constant 0 : index
    %c0_24 = arith.constant 0 : index
    %c0_25 = arith.constant 0 : index
    %192 = vector.load %arg4[%c0_23, %c0_24, %c0_25] : memref<2x1x1xf32, #tpu.memory_space<vmem>>, vector<2x1x1xf32>
    tpu.vector_store %arg4[%c0_23, %c0_24, %c0_25], %191 {strides = array<i32>} : memref<2x1x1xf32, #tpu.memory_space<vmem>>, vector<2x1x1xf32>,
    return
  }
  func.func @transform_0(%arg0: i32) -> (i32, i32, i32) {
    %c0_i32 = arith.constant 0 : i32
    %c0_i32_0 = arith.constant 0 : i32
    %c0_i32_1 = arith.constant 0 : i32
    return %arg0, %c0_i32, %c0_i32_0 : i32, i32, i32
  }
  func.func @transform_1(%arg0: i32) -> (i32, i32, i32) {
    %c0_i32 = arith.constant 0 : i32
    %c0_i32_0 = arith.constant 0 : i32
    %c0_i32_1 = arith.constant 0 : i32
    return %arg0, %c0_i32, %c0_i32_0 : i32, i32, i32
  }
  func.func @transform_2(%arg0: i32) -> (i32, i32, i32) {
    %c0_i32 = arith.constant 0 : i32
    %c0_i32_0 = arith.constant 0 : i32
    %c0_i32_1 = arith.constant 0 : i32
    return %arg0, %c0_i32, %c0_i32_0 : i32, i32, i32
  }
  func.func @transform_3(%arg0: i32) -> (i32, i32, i32) {
    %c0_i32 = arith.constant 0 : i32
    %c0_i32_0 = arith.constant 0 : i32
    %c0_i32_1 = arith.constant 0 : i32
    return %arg0, %c0_i32, %c0_i32_0 : i32, i32, i32
  }
}

</mosaic_0001>

<bundles_post_ra>
// kernel: tpu_custom_call.1
= control target key start
LH: loop header
LB: loop body
LE: loop exit
PB: predicated region body
PF: predicated region fallthrough
CT: control target
= control target key end

     0   :  { %8 = vsyncpa [#allocation3], 0  ;;  %s2206_s0 = inlined_call_operand.vmem [shape: f32[2,1,1], index: 0, kind: input, shape index: {}]   ;;  %s2207_s1 = inlined_call_operand.hbm [shape: f32[2,16,16], index: 1, kind: input, shape index: {}]   ;;  %s2208_s2 = inlined_call_operand.hbm [shape: f32[2,16,16], index: 2, kind: input, shape index: {}]   ;;  %s2209_s3 = inlined_call_operand.vmem [shape: f32[2,1,1], index: 3, kind: output, shape index: {}]  }
   0x1   :  { %9 = vsyncpa [#allocation5], 0  ;;  %s1266_s12 = smov [#allocation2]  }
   0x2   :  { %s17_s13 = sshll.u32 %s1266_s12, 4  ;;  %s18_s13 = int_to_ptr.vmem [resolvable:$true] %s17_s13 }
   0x3   :  { %s1230_s14 = scalar_lea.vmem %s18_s13, 512  ;;  %p1235_p1 = scmp.lt.s32.totalorder %s18_s13, %s18_s13 }
   0x4   :  { %p1231_p0 = scmp.ne.s32.totalorder %s18_s13, %s1230_s14  ;;  %p1236_p2 = scmp.lt.s32.totalorder %s1230_s14, %s1230_s14 }
   0x6   :  { %p1237_p3 = por %p1236_p2, %p1235_p1 }
   0x8   :  { %p1238_p4 = pnand %p1237_p3, %p1231_p0 }
   0xa   :  { %1241 = shalt.err (!%p1238_p4)
}
   0xb   :  { %s1267_s15 = smov 128   ;;  %s1268_s16 = smov 8  }
   0xc   :  { %23 = dma.hbm_to_vmem [thread:$0]  %s2207_s1, 512, %s18_s13, [#allocation3], %s1267_s15, %s1267_s15, %s1268_s16  }
   0xd   :  { %s1269_s19 = smov [#allocation4]  }
   0xe   :  { %s29_s20 = sshll.u32 %s1269_s19, 4  ;;  %s30_s20 = int_to_ptr.vmem [resolvable:$true] %s29_s20 }
   0xf   :  { %s1250_s21 = scalar_lea.vmem %s30_s20, 512  ;;  %p1255_p6 = scmp.lt.s32.totalorder %s30_s20, %s30_s20 }
  0x10   :  { %p1251_p5 = scmp.ne.s32.totalorder %s30_s20, %s1250_s21  ;;  %p1256_p7 = scmp.lt.s32.totalorder %s1250_s21, %s1250_s21 }
  0x12   :  { %p1257_p8 = por %p1256_p7, %p1255_p6 }
  0x14   :  { %p1258_p9 = pnand %p1257_p8, %p1251_p5 }
  0x16   :  { %1261 = shalt.err (!%p1258_p9)
}
  0x17   :  { %35 = dma.hbm_to_vmem [thread:$0]  %s2208_s2, 512, %s30_s20, [#allocation5], %s1267_s15, %s1267_s15, %s1268_s16  }
  0x18   :  { %1262 = dma.done.wait [#allocation3], 512  }
  0x19   :  { %1263 = vsyncadd [#allocation3], 4294966784 }
  0x1a   :  { %1264 = dma.done.wait [#allocation5], 512  }
  0x1b   :  { %1265 = vsyncadd [#allocation5], 4294966784  ;;  %v1303_v0 = vld [vmem:[#allocation2 + $0x10] sm:$0xff]  ;;  %v1305_v1 = vld [vmem:[#allocation2] sm:$0xff]  ;;  %s1270_s1 = smov 127   ;;  %s1271_s2 = smov 126  }
  0x1c   :  { %68 = vrot.lane.b32.xlu1 %v1303_v0, %s1270_s1  ;;  %64 = vrot.lane.b32.xlu0 %v1305_v1, %s1270_s1  ;;  %v1311_v2 = vld [vmem:[#allocation2 + $0x18] sm:$0xff]  ;;  %v1313_v3 = vld [vmem:[#allocation2 + $0x8] sm:$0xff]  ;;  %s1272_s24 = smov 125   ;;  %s1273_s25 = smov 124   ;;  %v1361_v5 = vld [vmem:[#allocation4] sm:$0xff]  ;;  %v1405_v9 = vmul.f32 %v1305_v1, %v1305_v1  ;;  %v1417_v11 = vmul.f32 %v1303_v0, %v1303_v0  ;;  %v1276_v16 = vmov 0  }
  0x1d   :  { %s1274_s26 = smov 123   ;;  %s1275_s27 = smov 122   ;;  %v1359_v4 = vld [vmem:[#allocation4 + $0x8] sm:$0xff]  ;;  %v1367_v6 = vld [vmem:[#allocation4 + $0x18] sm:$0xff]  ;;  %v1369_v7 = vld [vmem:[#allocation4 + $0x10] sm:$0xff]  ;;  %v1401_v8 = vmul.f32 %v1313_v3, %v1313_v3  ;;  %v1413_v10 = vmul.f32 %v1311_v2, %v1311_v2  ;;  %v1429_v13 = vmul.f32 %v1361_v5, %v1361_v5  ;;  %1213 = vset.pattern.permute.xlu1 %v1276_v16  ;;  %1212 = vset.pattern.permute.xlu0 %v1276_v16  ;;  %vm164_vm0 = vcmask 1046528  }
  0x1e   :  { %v1425_v12 = vmul.f32 %v1359_v4, %v1359_v4  ;;  %v1437_v14 = vmul.f32 %v1367_v6, %v1367_v6  ;;  %v1441_v15 = vmul.f32 %v1369_v7, %v1369_v7  ;;  %vm179_vm1 = vcmask 1045504  }
  0x1f   :  { %vm194_vm2 = vcmask 1044480   ;;  %vm209_vm3 = vcmask 1043456   ;;  %vm224_vm4 = vcmask 1042432   ;;  %vm239_vm5 = vcmask 1041408  }
  0x20   :  { %70 = vrot.lane.b32.xlu1 %v1311_v2, %s1270_s1  ;;  %66 = vrot.lane.b32.xlu0 %v1313_v3, %s1270_s1  ;;  %vm1166_vm6 = vcmask 74752   ;;  %vm1162_vm7 = vcmask 80896   ;;  %vm1192_vm8 = vcmask 0  }
  0x24   :  { %82 = vrot.lane.b32.xlu1 %v1313_v3, %s1271_s2  ;;  %80 = vrot.lane.b32.xlu0 %v1305_v1, %s1271_s2 }
  0x28   :  { %86 = vrot.lane.b32.xlu1 %v1311_v2, %s1271_s2  ;;  %84 = vrot.lane.b32.xlu0 %v1303_v0, %s1271_s2 }
  0x2c   :  { %98 = vrot.lane.b32.xlu1 %v1313_v3, %s1272_s24  ;;  %96 = vrot.lane.b32.xlu0 %v1305_v1, %s1272_s24 }
  0x30   :  { %102 = vrot.lane.b32.xlu1 %v1311_v2, %s1272_s24  ;;  %100 = vrot.lane.b32.xlu0 %v1303_v0, %s1272_s24 }
  0x34   :  { %114 = vrot.lane.b32.xlu1 %v1313_v3, %s1273_s25  ;;  %112 = vrot.lane.b32.xlu0 %v1305_v1, %s1273_s25 }
  0x38   :  { %118 = vrot.lane.b32.xlu1 %v1311_v2, %s1273_s25  ;;  %116 = vrot.lane.b32.xlu0 %v1303_v0, %s1273_s25 }
  0x3c   :  { %130 = vrot.lane.b32.xlu1 %v1313_v3, %s1274_s26  ;;  %128 = vrot.lane.b32.xlu0 %v1305_v1, %s1274_s26 }
  0x40   :  { %134 = vrot.lane.b32.xlu1 %v1311_v2, %s1274_s26  ;;  %132 = vrot.lane.b32.xlu0 %v1303_v0, %s1274_s26 }
  0x44   :  { %146 = vrot.lane.b32.xlu1 %v1313_v3, %s1275_s27  ;;  %144 = vrot.lane.b32.xlu0 %v1305_v1, %s1275_s27 }
  0x48   :  { %150 = vrot.lane.b32.xlu1 %v1311_v2, %s1275_s27  ;;  %148 = vrot.lane.b32.xlu0 %v1303_v0, %s1275_s27 }
  0x4c   :  { %264 = vrot.lane.b32.xlu1 %v1359_v4, %s1270_s1  ;;  %262 = vrot.lane.b32.xlu0 %v1361_v5, %s1270_s1 }
  0x50   :  { %268 = vrot.lane.b32.xlu1 %v1367_v6, %s1270_s1  ;;  %266 = vrot.lane.b32.xlu0 %v1369_v7, %s1270_s1 }
  0x54   :  { %280 = vrot.lane.b32.xlu1 %v1359_v4, %s1271_s2  ;;  %278 = vrot.lane.b32.xlu0 %v1361_v5, %s1271_s2 }
  0x58   :  { %284 = vrot.lane.b32.xlu1 %v1367_v6, %s1271_s2  ;;  %282 = vrot.lane.b32.xlu0 %v1369_v7, %s1271_s2 }
  0x5c   :  { %296 = vrot.lane.b32.xlu1 %v1359_v4, %s1272_s24  ;;  %294 = vrot.lane.b32.xlu0 %v1361_v5, %s1272_s24 }
  0x60   :  { %300 = vrot.lane.b32.xlu1 %v1367_v6, %s1272_s24  ;;  %298 = vrot.lane.b32.xlu0 %v1369_v7, %s1272_s24 }
  0x64   :  { %312 = vrot.lane.b32.xlu1 %v1359_v4, %s1273_s25  ;;  %310 = vrot.lane.b32.xlu0 %v1361_v5, %s1273_s25 }
  0x68   :  { %316 = vrot.lane.b32.xlu1 %v1367_v6, %s1273_s25  ;;  %314 = vrot.lane.b32.xlu0 %v1369_v7, %s1273_s25 }
  0x6c   :  { %460 = vrot.lane.b32.xlu1 %v1401_v8, %s1270_s1  ;;  %458 = vrot.lane.b32.xlu0 %v1405_v9, %s1270_s1 }
  0x70   :  { %464 = vrot.lane.b32.xlu1 %v1413_v10, %s1270_s1  ;;  %462 = vrot.lane.b32.xlu0 %v1417_v11, %s1270_s1 }
  0x74   :  { %656 = vrot.lane.b32.xlu1 %v1425_v12, %s1270_s1  ;;  %654 = vrot.lane.b32.xlu0 %v1429_v13, %s1270_s1 }
  0x78   :  { %660 = vrot.lane.b32.xlu1 %v1437_v14, %s1270_s1  ;;  %658 = vrot.lane.b32.xlu0 %v1441_v15, %s1270_s1 }
  0x7c   :  { %476 = vrot.lane.b32.xlu1 %v1401_v8, %s1271_s2  ;;  %474 = vrot.lane.b32.xlu0 %v1405_v9, %s1271_s2 }
  0x80   :  { %480 = vrot.lane.b32.xlu1 %v1413_v10, %s1271_s2  ;;  %478 = vrot.lane.b32.xlu0 %v1417_v11, %s1271_s2 }
  0x84   :  { %672 = vrot.lane.b32.xlu1 %v1425_v12, %s1271_s2  ;;  %670 = vrot.lane.b32.xlu0 %v1429_v13, %s1271_s2 }
  0x88   :  { %676 = vrot.lane.b32.xlu1 %v1437_v14, %s1271_s2  ;;  %674 = vrot.lane.b32.xlu0 %v1441_v15, %s1271_s2 }
  0x8c   :  { %492 = vrot.lane.b32.xlu1 %v1401_v8, %s1272_s24  ;;  %490 = vrot.lane.b32.xlu0 %v1405_v9, %s1272_s24 }
  0x8e   :  { %v1467_v17 = vpop.permute.xlu1 %68  ;;  %v1469_v18 = vpop.permute.xlu0 %64 }
  0x90   :  { %496 = vrot.lane.b32.xlu1 %v1413_v10, %s1272_s24  ;;  %494 = vrot.lane.b32.xlu0 %v1417_v11, %s1272_s24 }
  0x92   :  { %v1475_v19 = vpop.permute.xlu1 %70  ;;  %v1477_v20 = vpop.permute.xlu0 %66 }
  0x94   :  { %688 = vrot.lane.b32.xlu1 %v1425_v12, %s1272_s24  ;;  %686 = vrot.lane.b32.xlu0 %v1429_v13, %s1272_s24 }
  0x96   :  { %v1483_v21 = vpop.permute.xlu1 %82  ;;  %v1485_v22 = vpop.permute.xlu0 %80 }
  0x98   :  { %692 = vrot.lane.b32.xlu1 %v1437_v14, %s1272_s24  ;;  %690 = vrot.lane.b32.xlu0 %v1441_v15, %s1272_s24 }
  0x9a   :  { %v1491_v23 = vpop.permute.xlu1 %86  ;;  %v1493_v24 = vpop.permute.xlu0 %84 }
  0x9c   :  { %328 = vrot.lane.b32.xlu1 %v1359_v4, %s1274_s26  ;;  %326 = vrot.lane.b32.xlu0 %v1361_v5, %s1274_s26 }
  0x9e   :  { %v1499_v25 = vpop.permute.xlu1 %98  ;;  %v1501_v26 = vpop.permute.xlu0 %96 }
  0xa0   :  { %332 = vrot.lane.b32.xlu1 %v1367_v6, %s1274_s26  ;;  %330 = vrot.lane.b32.xlu0 %v1369_v7, %s1274_s26 }
  0xa2   :  { %v1507_v27 = vpop.permute.xlu1 %102  ;;  %v1509_v28 = vpop.permute.xlu0 %100 }
  0xa4   :  { %508 = vrot.lane.b32.xlu1 %v1401_v8, %s1273_s25  ;;  %506 = vrot.lane.b32.xlu0 %v1405_v9, %s1273_s25 }
  0xa6   :  { %v1515_v29 = vpop.permute.xlu1 %114  ;;  %v1517_v30 = vpop.permute.xlu0 %112 }
  0xa8   :  { %512 = vrot.lane.b32.xlu1 %v1413_v10, %s1273_s25  ;;  %510 = vrot.lane.b32.xlu0 %v1417_v11, %s1273_s25 }
  0xaa   :  { %v1523_v31 = vpop.permute.xlu1 %118  ;;  %v1525_v32 = vpop.permute.xlu0 %116 }
  0xac   :  { %704 = vrot.lane.b32.xlu1 %v1425_v12, %s1273_s25  ;;  %702 = vrot.lane.b32.xlu0 %v1429_v13, %s1273_s25 }
  0xae   :  { %v1531_v33 = vpop.permute.xlu1 %130  ;;  %v1533_v34 = vpop.permute.xlu0 %128 }
  0xb0   :  { %708 = vrot.lane.b32.xlu1 %v1437_v14, %s1273_s25  ;;  %706 = vrot.lane.b32.xlu0 %v1441_v15, %s1273_s25 }
  0xb2   :  { %v1539_v35 = vpop.permute.xlu1 %134  ;;  %v1541_v36 = vpop.permute.xlu0 %132 }
  0xb4   :  { %344 = vrot.lane.b32.xlu1 %v1359_v4, %s1275_s27  ;;  %342 = vrot.lane.b32.xlu0 %v1361_v5, %s1275_s27 }
  0xb6   :  { %v1547_v37 = vpop.permute.xlu1 %146  ;;  %v1549_v38 = vpop.permute.xlu0 %144 }
  0xb8   :  { %348 = vrot.lane.b32.xlu1 %v1367_v6, %s1275_s27  ;;  %346 = vrot.lane.b32.xlu0 %v1369_v7, %s1275_s27 }
  0xba   :  { %v1555_v39 = vpop.permute.xlu1 %150  ;;  %v1557_v40 = vpop.permute.xlu0 %148 }
  0xbc   :  { %524 = vrot.lane.b32.xlu1 %v1401_v8, %s1274_s26  ;;  %522 = vrot.lane.b32.xlu0 %v1405_v9, %s1274_s26 }
  0xbe   :  { %v265_v41 = vpop.permute.xlu1 %264  ;;  %v263_v42 = vpop.permute.xlu0 %262 }
  0xbf   :  { %v275_v53 = vadd.f32 %v265_v41, %v1359_v4  ;;  %v274_v54 = vadd.f32 %v263_v42, %v1361_v5 }
  0xc0   :  { %528 = vrot.lane.b32.xlu1 %v1413_v10, %s1274_s26  ;;  %526 = vrot.lane.b32.xlu0 %v1417_v11, %s1274_s26 }
  0xc2   :  { %v269_v43 = vpop.permute.xlu1 %268  ;;  %v267_v44 = vpop.permute.xlu0 %266 }
  0xc3   :  { %v277_v51 = vadd.f32 %v269_v43, %v1367_v6  ;;  %v276_v52 = vadd.f32 %v267_v44, %v1369_v7 }
  0xc4   :  { %720 = vrot.lane.b32.xlu1 %v1425_v12, %s1274_s26  ;;  %718 = vrot.lane.b32.xlu0 %v1429_v13, %s1274_s26 }
  0xc6   :  { %v281_v45 = vpop.permute.xlu1 %280  ;;  %v279_v46 = vpop.permute.xlu0 %278 }
  0xc7   :  { %v291_v59 = vadd.f32 %v281_v45, %v275_v53  ;;  %v290_v60 = vadd.f32 %v279_v46, %v274_v54  ;;  %v1601_v45 = vmul.f32 %v1359_v4, %v1313_v3  ;;  %v1605_v46 = vmul.f32 %v1361_v5, %v1305_v1 }
  0xc8   :  { %724 = vrot.lane.b32.xlu1 %v1437_v14, %s1274_s26  ;;  %722 = vrot.lane.b32.xlu0 %v1441_v15, %s1274_s26  ;;  %v1617_v4 = vmul.f32 %v1367_v6, %v1311_v2  ;;  %v1621_v5 = vmul.f32 %v1369_v7, %v1303_v0 }
  0xca   :  { %v285_v47 = vpop.permute.xlu1 %284  ;;  %v283_v48 = vpop.permute.xlu0 %282 }
  0xcb   :  { %v293_v55 = vadd.f32 %v285_v47, %v277_v51  ;;  %v292_v56 = vadd.f32 %v283_v48, %v276_v52 }
  0xcc   :  { %540 = vrot.lane.b32.xlu1 %v1401_v8, %s1275_s27  ;;  %538 = vrot.lane.b32.xlu0 %v1405_v9, %s1275_s27 }
  0xce   :  { %v297_v49 = vpop.permute.xlu1 %296  ;;  %v295_v50 = vpop.permute.xlu0 %294 }
  0xcf   :  { %v307_v63 = vadd.f32 %v297_v49, %v291_v59  ;;  %v306_v16 = vadd.f32 %v295_v50, %v290_v60 }
  0xd0   :  { %544 = vrot.lane.b32.xlu1 %v1413_v10, %s1275_s27  ;;  %542 = vrot.lane.b32.xlu0 %v1417_v11, %s1275_s27 }
  0xd2   :  { %v301_v57 = vpop.permute.xlu1 %300  ;;  %v299_v58 = vpop.permute.xlu0 %298 }
  0xd3   :  { %v309_v61 = vadd.f32 %v301_v57, %v293_v55  ;;  %v308_v62 = vadd.f32 %v299_v58, %v292_v56 }
  0xd4   :  { %736 = vrot.lane.b32.xlu1 %v1425_v12, %s1275_s27  ;;  %734 = vrot.lane.b32.xlu0 %v1429_v13, %s1275_s27 }
  0xd6   :  { %v313_v43 = vpop.permute.xlu1 %312  ;;  %v311_v41 = vpop.permute.xlu0 %310 }
  0xd7   :  { %v1591_v44 = vadd.f32 %v313_v43, %v307_v63  ;;  %v1593_v42 = vadd.f32 %v311_v41, %v306_v16 }
  0xd8   :  { %740 = vrot.lane.b32.xlu1 %v1437_v14, %s1275_s27  ;;  %738 = vrot.lane.b32.xlu0 %v1441_v15, %s1275_s27 }
  0xda   :  { %v317_v47 = vpop.permute.xlu1 %316  ;;  %v315_v48 = vpop.permute.xlu0 %314 }
  0xdb   :  { %v1607_v49 = vadd.f32 %v317_v47, %v309_v61  ;;  %v1609_v50 = vadd.f32 %v315_v48, %v308_v62 }
  0xdc   :  { %852 = vrot.lane.b32.xlu1 %v1601_v45, %s1270_s1  ;;  %850 = vrot.lane.b32.xlu0 %v1605_v46, %s1270_s1 }
  0xde   :  { %v461_v51 = vpop.permute.xlu1 %460  ;;  %v459_v52 = vpop.permute.xlu0 %458 }
  0xdf   :  { %v471_v57 = vadd.f32 %v461_v51, %v1401_v8  ;;  %v470_v58 = vadd.f32 %v459_v52, %v1405_v9 }
  0xe0   :  { %856 = vrot.lane.b32.xlu1 %v1617_v4, %s1270_s1  ;;  %854 = vrot.lane.b32.xlu0 %v1621_v5, %s1270_s1 }
  0xe2   :  { %v465_v53 = vpop.permute.xlu1 %464  ;;  %v463_v54 = vpop.permute.xlu0 %462 }
  0xe3   :  { %v473_v63 = vadd.f32 %v465_v53, %v1413_v10  ;;  %v472_v16 = vadd.f32 %v463_v54, %v1417_v11 }
  0xe4   :  { %868 = vrot.lane.b32.xlu1 %v1601_v45, %s1271_s2  ;;  %866 = vrot.lane.b32.xlu0 %v1605_v46, %s1271_s2 }
  0xe6   :  { %v657_v6 = vpop.permute.xlu1 %656  ;;  %v655_v55 = vpop.permute.xlu0 %654 }
  0xe7   :  { %v667_v9 = vadd.f32 %v657_v6, %v1425_v12  ;;  %v666_v48 = vadd.f32 %v655_v55, %v1429_v13  ;;  %v1084_v6 = vlaneseq  ;;  %v51_v13 = vld [vmem:[%s2206_s0 + $0x1] sm:$0x1] }
  0xe8   :  { %872 = vrot.lane.b32.xlu1 %v1617_v4, %s1271_s2  ;;  %870 = vrot.lane.b32.xlu0 %v1621_v5, %s1271_s2 }
  0xea   :  { %v661_v7 = vpop.permute.xlu1 %660  ;;  %v659_v56 = vpop.permute.xlu0 %658 }
  0xeb   :  { %v669_v11 = vadd.f32 %v661_v7, %v1437_v14  ;;  %v668_v53 = vadd.f32 %v659_v56, %v1441_v15  ;;  %v50_v14 = vld [vmem:[%s2206_s0] sm:$0x1] }
  0xec   :  { %884 = vrot.lane.b32.xlu1 %v1601_v45, %s1272_s24  ;;  %882 = vrot.lane.b32.xlu0 %v1605_v46, %s1272_s24 }
  0xee   :  { %v477_v59 = vpop.permute.xlu1 %476  ;;  %v475_v60 = vpop.permute.xlu0 %474 }
  0xef   :  { %v487_v61 = vadd.f32 %v477_v59, %v471_v57  ;;  %v486_v62 = vadd.f32 %v475_v60, %v470_v58  ;;  %v53_v60 = vmul.f32 0.01, %v51_v13 }
  0xf0   :  { %888 = vrot.lane.b32.xlu1 %v1617_v4, %s1272_s24  ;;  %886 = vrot.lane.b32.xlu0 %v1621_v5, %s1272_s24 }
  0xf2   :  { %v481_v43 = vpop.permute.xlu1 %480  ;;  %v479_v41 = vpop.permute.xlu0 %478 }
  0xf3   :  { %v489_v47 = vadd.f32 %v481_v43, %v473_v63  ;;  %v488_v8 = vadd.f32 %v479_v41, %v472_v16  ;;  %v1085_v63 = vshrl.u32 %v1084_v6, 7  ;;  %v52_v16 = vmul.f32 0.01, %v50_v14 }
  0xf4   :  { %900 = vrot.lane.b32.xlu1 %v1601_v45, %s1273_s25  ;;  %898 = vrot.lane.b32.xlu0 %v1605_v46, %s1273_s25 }
  0xf6   :  { %v673_v51 = vpop.permute.xlu1 %672  ;;  %v671_v52 = vpop.permute.xlu0 %670 }
  0xf7   :  { %v683_v57 = vadd.f32 %v673_v51, %v667_v9  ;;  %v682_v10 = vadd.f32 %v671_v52, %v666_v48  ;;  %v55_v51 = vmul.f32 %v53_v60, %v53_v60  ;;  %v56_v52 = vmul.f32 0.03, %v50_v14 }
  0xf8   :  { %904 = vrot.lane.b32.xlu1 %v1617_v4, %s1273_s25  ;;  %902 = vrot.lane.b32.xlu0 %v1621_v5, %s1273_s25 }
  0xfa   :  { %v677_v54 = vpop.permute.xlu1 %676  ;;  %v675_v58 = vpop.permute.xlu0 %674 }
  0xfb   :  { %v685_v59 = vadd.f32 %v677_v54, %v669_v11  ;;  %v684_v12 = vadd.f32 %v675_v58, %v668_v53  ;;  %v57_v11 = vmul.f32 0.03, %v51_v13  ;;  %v76_v13 = vadd.f32 %v1469_v18, %v1305_v1 }
  0xfc   :  { %916 = vrot.lane.b32.xlu1 %v1601_v45, %s1274_s26  ;;  %914 = vrot.lane.b32.xlu0 %v1605_v46, %s1274_s26 }
  0xfe   :  { %v493_v15 = vpop.permute.xlu1 %492  ;;  %v491_v55 = vpop.permute.xlu0 %490 }
  0xff   :  { %v1669_v7 = vadd.f32 %v493_v15, %v487_v61  ;;  %v1671_v56 = vadd.f32 %v491_v55, %v486_v62  ;;  %v1086_v61 = vsub.s32 0, %v1085_v63  ;;  %v54_v62 = vmul.f32 %v52_v16, %v52_v16 }
 0x100   :  { %920 = vrot.lane.b32.xlu1 %v1617_v4, %s1274_s26  ;;  %918 = vrot.lane.b32.xlu0 %v1621_v5, %s1274_s26  ;;  %v58_v15 = vmul.f32 %v56_v52, %v56_v52  ;;  %v59_v55 = vmul.f32 %v57_v11, %v57_v11 }
 0x102   :  { %v497_v43 = vpop.permute.xlu1 %496  ;;  %v495_v41 = vpop.permute.xlu0 %494  ;;  %v1113_v16 = vrot.slane %v58_v15, %v1086_v61 }
 0x103   :  { %v1677_v9 = vadd.f32 %v497_v43, %v489_v47  ;;  %v1679_v48 = vadd.f32 %v495_v41, %v488_v8  ;;  %v1091_v47 = vrot.slane %v55_v51, %v1086_v61  ;;  %v1087_v8 = vrot.slane %v54_v62, %v1086_v61 }
 0x104   :  { %932 = vrot.lane.b32.xlu1 %v1601_v45, %s1275_s27  ;;  %930 = vrot.lane.b32.xlu0 %v1605_v46, %s1275_s27  ;;  %v1117_v43 = vrot.slane %v59_v55, %v1086_v61  ;;  %v92_v51 = vadd.f32 %v1485_v22, %v76_v13 }
 0x106   :  { %v689_v53 = vpop.permute.xlu1 %688  ;;  %v687_v54 = vpop.permute.xlu0 %686  ;;  %v108_v1 = vadd.f32 %v1501_v26, %v92_v51 }
 0x107   :  { %v1685_v58 = vadd.f32 %v689_v53, %v683_v57  ;;  %v1687_v6 = vadd.f32 %v687_v54, %v682_v10  ;;  %v77_v57 = vadd.f32 %v1477_v20, %v1313_v3  ;;  %v78_v20 = vadd.f32 %v1467_v17, %v1303_v0 }
 0x108   :  { %936 = vrot.lane.b32.xlu1 %v1617_v4, %s1275_s27  ;;  %934 = vrot.lane.b32.xlu0 %v1621_v5, %s1275_s27 }
 0x109   :  { %v93_v41 = vadd.f32 %v1483_v21, %v77_v57  ;;  %v79_v21 = vadd.f32 %v1475_v19, %v1311_v2 }
 0x10a   :  { %v693_v60 = vpop.permute.xlu1 %692  ;;  %v691_v63 = vpop.permute.xlu0 %690 }
 0x10b   :  { %v1697_v10 = vadd.f32 %v693_v60, %v685_v59  ;;  %v1699_v14 = vadd.f32 %v691_v63, %v684_v12  ;;  %v109_v11 = vadd.f32 %v1499_v25, %v93_v41  ;;  %v124_v25 = vadd.f32 %v1517_v30, %v108_v1 }
 0x10c   :  { %1097 = vperm.xlu1 %1213, %v1091_v47   ;;  %1093 = vperm.xlu0 %1212, %v1087_v8   ;;  %v95_v26 = vadd.f32 %v1491_v23, %v79_v21 }
 0x10d   :  { %v125_v22 = vadd.f32 %v1515_v29, %v109_v11  ;;  %v140_v61 = vadd.f32 %v1533_v34, %v124_v25 }
 0x10e   :  { %v329_v62 = vpop.permute.xlu1 %328  ;;  %v327_v52 = vpop.permute.xlu0 %326  ;;  %v111_v17 = vadd.f32 %v1507_v27, %v95_v26 }
 0x10f   :  { %v1706_v3 = vadd.f32 %v329_v62, %v1591_v44  ;;  %v1709_v18 = vadd.f32 %v327_v52, %v1593_v42  ;;  %v94_v44 = vadd.f32 %v1493_v24, %v78_v20  ;;  %v141_v42 = vadd.f32 %v1531_v33, %v125_v22 }
 0x110   :  { %1119 = vperm.xlu1 %1213, %v1113_v16   ;;  %1123 = vperm.xlu0 %1212, %v1117_v43   ;;  %v1733_v24 = vadd.f32 %v1549_v38, %v140_v61  ;;  %v127_v33 = vadd.f32 %v1523_v31, %v111_v17 }
 0x111   :  { %v110_v19 = vadd.f32 %v1509_v28, %v94_v44  ;;  %v1730_v23 = vadd.f32 %v1547_v37, %v141_v42 }
 0x112   :  { %v333_v59 = vpop.permute.xlu1 %332  ;;  %v331_v12 = vpop.permute.xlu0 %330  ;;  %v143_v27 = vadd.f32 %v1539_v35, %v127_v33  ;;  %v165_v38 = vrot.slane %v1733_v24, 1  ;;  %v195_v63 = vrot.slane %v1733_v24, 3  ;;  %v210_v1 = vrot.slane %v1733_v24, 4 }
 0x113   :  { %v1722_v0 = vadd.f32 %v333_v59, %v1607_v49  ;;  %v1725_v2 = vadd.f32 %v331_v12, %v1609_v50  ;;  %v126_v34 = vadd.f32 %v1525_v32, %v110_v19  ;;  %v166_v37 = vrot.slane %v1730_v23, 1 }
 0x114   :  { %v1748_v31 = vadd.f32 %v1555_v39, %v143_v27  ;;  %v181_v15 = vrot.slane %v1730_v23, 2  ;;  %v196_v13 = vrot.slane %v1730_v23, 3  ;;  %v211_v20 = vrot.slane %v1730_v23, 4 }
 0x115   :  { %v142_v28 = vadd.f32 %v1541_v36, %v126_v34  ;;  %v167_v36 = vsel %vm164_vm0, %v165_v38, %v166_v37  ;;  %v176_v60 = vadd.f32 %v166_v37, %v1730_v23  ;;  %v225_v25 = vrot.slane %v1733_v24, 5 }
 0x116   :  { %v509_v29 = vpop.permute.xlu1 %508  ;;  %v507_v30 = vpop.permute.xlu0 %506  ;;  %v169_v39 = vrot.slane %v1748_v31, 1  ;;  %v184_v51 = vrot.slane %v1748_v31, 2  ;;  %v199_v21 = vrot.slane %v1748_v31, 3  ;;  %v214_v22 = vrot.slane %v1748_v31, 4 }
 0x117   :  { %v1738_v49 = vadd.f32 %v509_v29, %v1669_v7  ;;  %v1741_v50 = vadd.f32 %v507_v30, %v1671_v56  ;;  %v1751_v32 = vadd.f32 %v1557_v40, %v142_v28  ;;  %v180_v56 = vrot.slane %v1733_v24, 2 }
 0x118   :  { %v191_v11 = vadd.f32 %v181_v15, %v176_v60  ;;  %v178_v44 = vadd.f32 %v169_v39, %v1748_v31  ;;  %v229_v59 = vrot.slane %v1748_v31, 5  ;;  %v244_v12 = vrot.slane %v1748_v31, 6 }
 0x119   :  { %v168_v40 = vrot.slane %v1751_v32, 1  ;;  %v183_v57 = vrot.slane %v1751_v32, 2  ;;  %v198_v29 = vrot.slane %v1751_v32, 3  ;;  %v212_v34 = vsel %vm209_vm3, %v210_v1, %v211_v20 }
 0x11a   :  { %v513_v53 = vpop.permute.xlu1 %512  ;;  %v511_v54 = vpop.permute.xlu0 %510  ;;  %v206_v33 = vadd.f32 %v196_v13, %v191_v11  ;;  %v226_v27 = vrot.slane %v1730_v23, 5 }
 0x11b   :  { %v1754_v7 = vadd.f32 %v513_v53, %v1677_v9  ;;  %v1757_v35 = vadd.f32 %v511_v54, %v1679_v48  ;;  %v175_v48 = vadd.f32 %v167_v36, %v1733_v24  ;;  %v170_v62 = vsel %vm164_vm0, %v168_v40, %v169_v39 }
 0x11c   :  { %v1794_v42 = vadd.f32 %v170_v62, %v1751_v32  ;;  %v185_v19 = vsel %vm179_vm1, %v183_v57, %v184_v51  ;;  %v240_v39 = vrot.slane %v1733_v24, 6  ;;  %v221_v11 = vadd.f32 %v211_v20, %v206_v33 }
 0x11e   :  { %v705_v47 = vpop.permute.xlu1 %704  ;;  %v703_v8 = vpop.permute.xlu0 %702 }
 0x11f   :  { %v1765_v55 = vadd.f32 %v705_v47, %v1685_v58  ;;  %v1768_v9 = vadd.f32 %v703_v8, %v1687_v6  ;;  %v182_v58 = vsel %vm179_vm1, %v180_v56, %v181_v15 }
 0x120   :  { %v190_v52 = vadd.f32 %v182_v58, %v175_v48 }
 0x122   :  { %v709_v16 = vpop.permute.xlu1 %708  ;;  %v707_v43 = vpop.permute.xlu0 %706 }
 0x123   :  { %v1777_v41 = vadd.f32 %v709_v16, %v1697_v10  ;;  %v1780_v6 = vadd.f32 %v707_v43, %v1699_v14  ;;  %v197_v10 = vsel %vm194_vm2, %v195_v63, %v196_v13 }
 0x124   :  { %v205_v30 = vadd.f32 %v197_v10, %v190_v52 }
 0x126   :  { %v345_v14 = vpop.permute.xlu1 %344  ;;  %v343_v26 = vpop.permute.xlu0 %342  ;;  %v220_v52 = vadd.f32 %v212_v34, %v205_v30  ;;  %v227_v30 = vsel %vm224_vm4, %v225_v25, %v226_v27 }
 0x127   :  { %v1797_v61 = vadd.f32 %v345_v14, %v1706_v3  ;;  %v1800_v17 = vadd.f32 %v343_v26, %v1709_v18 }
 0x129   :  { %v362_v28 = vrot.slane %v1800_v17, 1  ;;  %v376_v3 = vrot.slane %v1800_v17, 2  ;;  %v363_v37 = vrot.slane %v1797_v61, 1  ;;  %v377_v18 = vrot.slane %v1797_v61, 2 }
 0x12a   :  { %v349_v38 = vpop.permute.xlu1 %348  ;;  %v347_v53 = vpop.permute.xlu0 %346  ;;  %v390_v54 = vrot.slane %v1800_v17, 3  ;;  %v391_v36 = vrot.slane %v1797_v61, 3  ;;  %v404_v56 = vrot.slane %v1800_v17, 4  ;;  %v405_v47 = vrot.slane %v1797_v61, 4 }
 0x12b   :  { %v1817_v8 = vadd.f32 %v349_v38, %v1722_v0  ;;  %v356_v15 = vadd.f32 %v347_v53, %v1725_v2  ;;  %v364_v40 = vsel %vm164_vm0, %v362_v28, %v363_v37  ;;  %v378_v60 = vsel %vm179_vm1, %v376_v3, %v377_v18 }
 0x12c   :  { %v372_v48 = vadd.f32 %v364_v40, %v1800_v17  ;;  %v392_v63 = vsel %vm194_vm2, %v390_v54, %v391_v36  ;;  %v406_v0 = vsel %vm209_vm3, %v404_v56, %v405_v47  ;;  %v373_v26 = vadd.f32 %v363_v37, %v1797_v61 }
 0x12d   :  { %v365_v13 = vrot.slane %v356_v15, 1  ;;  %v379_v57 = vrot.slane %v356_v15, 2  ;;  %v366_v2 = vrot.slane %v1817_v8, 1  ;;  %v380_v24 = vrot.slane %v1817_v8, 2 }
 0x12e   :  { %v1832_v16 = vpop.permute.xlu1 %524  ;;  %v1834_v43 = vpop.permute.xlu0 %522  ;;  %v2211_v58 = vrot.slane %v1817_v8, 3  ;;  %v2210_v62 = vrot.slane %v1817_v8, 4  ;;  %v422_v1 = vrot.slane %v1817_v8, 5  ;;  %v436_v10 = vrot.slane %v1817_v8, 6 }
 0x12f   :  { %v367_v14 = vsel %vm164_vm0, %v365_v13, %v366_v2  ;;  %v381_v3 = vsel %vm179_vm1, %v379_v57, %v380_v24  ;;  %v393_v38 = vrot.slane %v356_v15, 3  ;;  %v407_v53 = vrot.slane %v356_v15, 4 }
 0x130   :  { %v374_v28 = vadd.f32 %v367_v14, %v356_v15  ;;  %v421_v54 = vrot.slane %v356_v15, 5  ;;  %v435_v56 = vrot.slane %v356_v15, 6  ;;  %v386_v20 = vadd.f32 %v378_v60, %v372_v48 }
 0x131   :  { %v395_v13 = vsel %vm194_vm2, %v393_v38, %v2211_v58  ;;  %v409_v37 = vsel %vm209_vm3, %v407_v53, %v2210_v62  ;;  %v241_v57 = vrot.slane %v1730_v23, 6  ;;  %v193_v14 = vadd.f32 %v184_v51, %v178_v44 }
 0x132   :  { %v529_v33 = vpop.permute.xlu1 %528  ;;  %v527_v34 = vpop.permute.xlu0 %526  ;;  %v388_v40 = vadd.f32 %v381_v3, %v374_v28  ;;  %v423_v25 = vsel %vm224_vm4, %v421_v54, %v422_v1  ;;  %v235_v15 = vadd.f32 %v227_v30, %v220_v52  ;;  %v236_v48 = vadd.f32 %v226_v27, %v221_v11 }
 0x133   :  { %v437_v28 = vsel %vm239_vm5, %v435_v56, %v436_v10  ;;  %v387_v3 = vadd.f32 %v377_v18, %v373_v26  ;;  %v400_v38 = vadd.f32 %v392_v63, %v386_v20  ;;  %v192_v53 = vadd.f32 %v185_v19, %v1794_v42 }
 0x134   :  { %v402_v60 = vadd.f32 %v395_v13, %v388_v40  ;;  %v418_v23 = vrot.slane %v1800_v17, 5  ;;  %v419_v62 = vrot.slane %v1797_v61, 5  ;;  %v432_v51 = vrot.slane %v1800_v17, 6 }
 0x135   :  { %v242_v27 = vsel %vm239_vm5, %v240_v39, %v241_v57  ;;  %v414_v52 = vadd.f32 %v406_v0, %v400_v38  ;;  %v433_v11 = vrot.slane %v1797_v61, 6  ;;  %v208_v18 = vadd.f32 %v199_v21, %v193_v14 }
 0x136   :  { %v721_v44 = vpop.permute.xlu1 %720  ;;  %v719_v58 = vpop.permute.xlu0 %718  ;;  %v416_v54 = vadd.f32 %v409_v37, %v402_v60  ;;  %v250_v63 = vadd.f32 %v242_v27, %v235_v15  ;;  %v251_v26 = vadd.f32 %v241_v57, %v236_v48  ;;  %v420_v42 = vsel %vm224_vm4, %v418_v23, %v419_v62 }
 0x137   :  { %v401_v56 = vadd.f32 %v391_v36, %v387_v3  ;;  %v428_v17 = vadd.f32 %v420_v42, %v414_v52  ;;  %v434_v30 = vsel %vm239_vm5, %v432_v51, %v433_v11  ;;  %v200_v39 = vsel %vm194_vm2, %v198_v29, %v199_v21 }
 0x138   :  { %v430_v19 = vadd.f32 %v423_v25, %v416_v54  ;;  %v213_v0 = vrot.slane %v1751_v32, 4  ;;  %v228_v20 = vrot.slane %v1751_v32, 5  ;;  %v243_v40 = vrot.slane %v1751_v32, 6 }
 0x139   :  { %v375_v36 = vadd.f32 %v366_v2, %v1817_v8  ;;  %v207_v57 = vadd.f32 %v200_v39, %v192_v53  ;;  %v1888_v25 = vadd.f32 %v434_v30, %v428_v17  ;;  %v223_v21 = vadd.f32 %v214_v22, %v208_v18 }
 0x13a   :  { %v1881_v13 = vpop.permute.xlu1 %724  ;;  %v1883_v37 = vpop.permute.xlu0 %722  ;;  %v1886_v14 = vadd.f32 %v437_v28, %v430_v19  ;;  %v1892_v29 = vmul.f32 0.020408163, %v250_v63  ;;  %v1894_v15 = vmul.f32 0.020408163, %v251_v26  ;;  %v415_v32 = vadd.f32 %v405_v47, %v401_v56 }
 0x13b   :  { %v535_v48 = vadd.f32 %v1832_v16, %v1738_v49  ;;  %v534_v2 = vadd.f32 %v1834_v43, %v1741_v50  ;;  %v215_v60 = vsel %vm209_vm3, %v213_v0, %v214_v22  ;;  %v389_v38 = vadd.f32 %v380_v24, %v375_v36 }
 0x13c   :  { %v1907_v53 = vadd.f32 %v215_v60, %v207_v57  ;;  %v1912_v61 = vsel %vm224_vm4, %v228_v20, %v229_v59  ;;  %v1917_v49 = vsel %vm239_vm5, %v243_v40, %v244_v12  ;;  %v1923_v47 = vadd.f32 %v229_v59, %v223_v21 }
 0x13d   :  { %v1927_v24 = vmul.f32 %v1892_v29, %v1892_v29  ;;  %v537_v16 = vadd.f32 %v529_v33, %v1754_v7  ;;  %v536_v43 = vadd.f32 %v527_v34, %v1757_v35  ;;  %v429_v23 = vadd.f32 %v419_v62, %v415_v32 }
 0x13e   :  { %v541_v28 = vpop.permute.xlu1 %540  ;;  %v539_v3 = vpop.permute.xlu0 %538  ;;  %v1933_v51 = vmul.f32 %v1894_v15, %v1894_v15  ;;  %v731_v18 = vadd.f32 %v721_v44, %v1765_v55  ;;  %v2212_v42 = vrot.slane %v1817_v8, 3  ;;  %v730_v39 = vadd.f32 %v719_v58, %v1768_v9 }
 0x13f   :  { %v1919_v50 = vadd.f32 %v541_v28, %v535_v48  ;;  %v550_v22 = vadd.f32 %v539_v3, %v534_v2  ;;  %v443_v0 = vadd.f32 %v433_v11, %v429_v23  ;;  %v2213_v9 = vrot.slane %v1817_v8, 4 }
 0x140   :  { %v403_v7 = vadd.f32 %v2212_v42, %v389_v38  ;;  %v1966_v42 = vmul.f32 0.020408163, %v1888_v25 }
 0x141   :  { %v558_v54 = vrot.slane %v550_v22, 1  ;;  %v572_v27 = vrot.slane %v550_v22, 2  ;;  %v559_v52 = vrot.slane %v1919_v50, 1  ;;  %v573_v59 = vrot.slane %v1919_v50, 2 }
 0x142   :  { %v545_v63 = vpop.permute.xlu1 %544  ;;  %v543_v26 = vpop.permute.xlu0 %542  ;;  %v587_v35 = vrot.slane %v1919_v50, 3  ;;  %v601_v62 = vrot.slane %v1919_v50, 4  ;;  %v615_v34 = vrot.slane %v1919_v50, 5  ;;  %v629_v19 = vrot.slane %v1919_v50, 6 }
 0x143   :  { %v569_v33 = vadd.f32 %v559_v52, %v1919_v50  ;;  %v560_v56 = vsel %vm164_vm0, %v558_v54, %v559_v52  ;;  %v574_v55 = vsel %vm179_vm1, %v572_v27, %v573_v59  ;;  %v586_v44 = vrot.slane %v550_v22, 3 }
 0x144   :  { %v568_v17 = vadd.f32 %v560_v56, %v550_v22  ;;  %v600_v30 = vrot.slane %v550_v22, 4  ;;  %v614_v40 = vrot.slane %v550_v22, 5  ;;  %v628_v2 = vrot.slane %v550_v22, 6 }
 0x145   :  { %v583_v20 = vadd.f32 %v573_v59, %v569_v33  ;;  %v588_v32 = vsel %vm194_vm2, %v586_v44, %v587_v35  ;;  %v1953_v50 = vadd.f32 %v543_v26, %v536_v43  ;;  %v1957_v58 = vadd.f32 %v2213_v9, %v403_v7 }
 0x146   :  { %v737_v36 = vpop.permute.xlu1 %736  ;;  %v735_v57 = vpop.permute.xlu0 %734  ;;  %v582_v21 = vadd.f32 %v574_v55, %v568_v17  ;;  %v602_v48 = vsel %vm209_vm3, %v600_v30, %v601_v62  ;;  %v616_v38 = vsel %vm224_vm4, %v614_v40, %v615_v34  ;;  %v630_v23 = vsel %vm239_vm5, %v628_v2, %v629_v19 }
 0x147   :  { %v1950_v60 = vadd.f32 %v737_v36, %v731_v18  ;;  %v746_v28 = vadd.f32 %v735_v57, %v730_v39  ;;  %v597_v3 = vadd.f32 %v587_v35, %v583_v20  ;;  %v733_v59 = vadd.f32 %v1881_v13, %v1777_v41 }
 0x148   :  { %v596_v11 = vadd.f32 %v588_v32, %v582_v21  ;;  %v732_v18 = vadd.f32 %v1883_v37, %v1780_v6  ;;  %v1969_v35 = vmul.f32 0.020408163, %v443_v0  ;;  %v1976_v37 = vadd.f32 %v545_v63, %v537_v16 }
 0x149   :  { %v754_v54 = vrot.slane %v746_v28, 1  ;;  %v768_v27 = vrot.slane %v746_v28, 2  ;;  %v611_v52 = vadd.f32 %v601_v62, %v597_v3  ;;  %v755_v22 = vrot.slane %v1950_v60, 1 }
 0x14a   :  { %v741_v43 = vpop.permute.xlu1 %740  ;;  %v739_v26 = vpop.permute.xlu0 %738  ;;  %v769_v7 = vrot.slane %v1950_v60, 2  ;;  %v783_v56 = vrot.slane %v1950_v60, 3  ;;  %v797_v17 = vrot.slane %v1950_v60, 4  ;;  %v610_v41 = vadd.f32 %v602_v48, %v596_v11 }
 0x14b   :  { %v625_v33 = vadd.f32 %v615_v34, %v611_v52  ;;  %v765_v62 = vadd.f32 %v755_v22, %v1950_v60  ;;  %v756_v13 = vsel %vm164_vm0, %v754_v54, %v755_v22  ;;  %v561_v25 = vrot.slane %v1953_v50, 1 }
 0x14c   :  { %v770_v6 = vsel %vm179_vm1, %v768_v27, %v769_v7  ;;  %v811_v44 = vrot.slane %v1950_v60, 5  ;;  %v624_v39 = vadd.f32 %v616_v38, %v610_v41  ;;  %v764_v0 = vadd.f32 %v756_v13, %v746_v28 }
 0x14d   :  { %v779_v55 = vadd.f32 %v769_v7, %v765_v62  ;;  %v782_v20 = vrot.slane %v746_v28, 3  ;;  %v796_v40 = vrot.slane %v746_v28, 4  ;;  %v1984_v36 = vadd.f32 %v739_v26, %v732_v18 }
 0x14e   :  { %v1980_v30 = vpop.permute.xlu1 %852  ;;  %v1982_v34 = vpop.permute.xlu0 %850  ;;  %v639_v57 = vadd.f32 %v629_v19, %v625_v33  ;;  %v825_v16 = vrot.slane %v1950_v60, 6  ;;  %v638_v63 = vadd.f32 %v630_v23, %v624_v39  ;;  %v778_v32 = vadd.f32 %v770_v6, %v764_v0 }
 0x14f   :  { %v793_v21 = vadd.f32 %v783_v56, %v779_v55  ;;  %v784_v48 = vsel %vm194_vm2, %v782_v20, %v783_v56  ;;  %v798_v2 = vsel %vm209_vm3, %v796_v40, %v797_v17  ;;  %v575_v3 = vrot.slane %v1953_v50, 2 }
 0x150   :  { %v810_v11 = vrot.slane %v746_v28, 5  ;;  %v824_v38 = vrot.slane %v746_v28, 6  ;;  %v1996_v19 = vmul.f32 %v1966_v42, %v1966_v42  ;;  %v792_v60 = vadd.f32 %v784_v48, %v778_v32 }
 0x151   :  { %v807_v9 = vadd.f32 %v797_v17, %v793_v21  ;;  %v562_v23 = vrot.slane %v1976_v37, 1  ;;  %v576_v52 = vrot.slane %v1976_v37, 2  ;;  %v2002_v22 = vmul.f32 %v1969_v35, %v1969_v35 }
 0x152   :  { %v1990_v54 = vpop.permute.xlu1 %856  ;;  %v1992_v27 = vpop.permute.xlu0 %854  ;;  %v643_v18 = vmul.f32 0.020408163, %v639_v57  ;;  %v812_v28 = vsel %vm224_vm4, %v810_v11, %v811_v44  ;;  %v2005_v7 = vadd.f32 %v741_v43, %v733_v59  ;;  %v757_v33 = vrot.slane %v1984_v36, 1 }
 0x153   :  { %v821_v26 = vadd.f32 %v811_v44, %v807_v9  ;;  %v806_v62 = vadd.f32 %v798_v2, %v792_v60  ;;  %v826_v56 = vsel %vm239_vm5, %v824_v38, %v825_v16  ;;  %v563_v41 = vsel %vm164_vm0, %v561_v25, %v562_v23 }
 0x154   :  { %v571_v13 = vadd.f32 %v562_v23, %v1976_v37  ;;  %v577_v6 = vsel %vm179_vm1, %v575_v3, %v576_v52  ;;  %v642_v0 = vmul.f32 0.020408163, %v638_v63  ;;  %v570_v59 = vadd.f32 %v563_v41, %v1953_v50 }
 0x155   :  { %v835_v17 = vadd.f32 %v825_v16, %v821_v26  ;;  %v820_v44 = vadd.f32 %v812_v28, %v806_v62  ;;  %v589_v43 = vrot.slane %v1953_v50, 3  ;;  %v771_v20 = vrot.slane %v1984_v36, 2 }
 0x156   :  { %v2012_v55 = vpop.permute.xlu1 %868  ;;  %v2014_v39 = vpop.permute.xlu0 %866  ;;  %v1043_v57 = vsub.f32 %v643_v18, %v1933_v51  ;;  %v585_v25 = vadd.f32 %v576_v52, %v571_v13  ;;  %v584_v16 = vadd.f32 %v577_v6, %v570_v59  ;;  %v590_v32 = vrot.slane %v1976_v37, 3 }
 0x157   :  { %v839_v40 = vmul.f32 0.020408163, %v835_v17  ;;  %v834_v21 = vadd.f32 %v826_v56, %v820_v44  ;;  %v603_v48 = vrot.slane %v1953_v50, 4  ;;  %v604_v63 = vrot.slane %v1976_v37, 4 }
 0x158   :  { %v617_v3 = vrot.slane %v1953_v50, 5  ;;  %v618_v9 = vrot.slane %v1976_v37, 5  ;;  %v1042_v23 = vsub.f32 %v642_v0, %v1927_v24  ;;  %v591_v52 = vsel %vm194_vm2, %v589_v43, %v590_v32 }
 0x159   :  { %v1055_v2 = vsub.f32 %v839_v40, %v2002_v22  ;;  %v838_v60 = vmul.f32 0.020408163, %v834_v21  ;;  %v599_v18 = vadd.f32 %v590_v32, %v585_v25  ;;  %v1047_v28 = vmul.f32 1.0208334, %v1043_v57 }
 0x15a   :  { %v2026_v11 = vpop.permute.xlu1 %872  ;;  %v2028_v38 = vpop.permute.xlu0 %870  ;;  %v598_v62 = vadd.f32 %v591_v52, %v584_v16  ;;  %v631_v56 = vrot.slane %v1953_v50, 6  ;;  %v605_v41 = vsel %vm209_vm3, %v603_v48, %v604_v63  ;;  %v619_v6 = vsel %vm224_vm4, %v617_v3, %v618_v9 }
 0x15b   :  { %v1059_v26 = vmul.f32 1.0208334, %v1055_v2  ;;  %v1054_v17 = vsub.f32 %v838_v60, %v1996_v19  ;;  %v613_v13 = vadd.f32 %v604_v63, %v599_v18  ;;  %v632_v0 = vrot.slane %v1976_v37, 6 }
 0x15c   :  { %v612_v59 = vadd.f32 %v605_v41, %v598_v62  ;;  %v758_v43 = vrot.slane %v2005_v7, 1  ;;  %v237_v50 = vadd.f32 %v1912_v61, %v1907_v53  ;;  %v1046_v25 = vmul.f32 1.0208334, %v1042_v23 }
 0x15d   :  { %v2036_v44 = vadd.f32 %v1059_v26, %v1047_v28  ;;  %v1058_v21 = vmul.f32 1.0208334, %v1054_v17  ;;  %v772_v16 = vrot.slane %v2005_v7, 2  ;;  %v431_v32 = vadd.f32 %v422_v1, %v1957_v58 }
 0x15e   :  { %v2040_v40 = vpop.permute.xlu1 %884  ;;  %v2042_v57 = vpop.permute.xlu0 %882  ;;  %v626_v48 = vadd.f32 %v619_v6, %v612_v59  ;;  %v627_v2 = vadd.f32 %v618_v9, %v613_v13  ;;  %v633_v37 = vsel %vm239_vm5, %v631_v56, %v632_v0  ;;  %v759_v3 = vsel %vm164_vm0, %v757_v33, %v758_v43 }
 0x15f   :  { %v2051_v63 = vadd.f32 %v1058_v21, %v1046_v25  ;;  %v767_v60 = vadd.f32 %v758_v43, %v2005_v7  ;;  %v785_v53 = vrot.slane %v1984_v36, 3  ;;  %v766_v23 = vadd.f32 %v759_v3, %v1984_v36 }
 0x160   :  { %v640_v61 = vadd.f32 %v633_v37, %v626_v48  ;;  %v773_v52 = vsel %vm179_vm1, %v771_v20, %v772_v16  ;;  %v786_v18 = vrot.slane %v2005_v7, 3  ;;  %v253_v9 = vadd.f32 %v244_v12, %v1923_v47 }
 0x161   :  { %v781_v33 = vadd.f32 %v772_v16, %v767_v60  ;;  %v799_v26 = vrot.slane %v1984_v36, 4  ;;  %v800_v28 = vrot.slane %v2005_v7, 4  ;;  %v445_v62 = vadd.f32 %v436_v10, %v431_v32 }
 0x162   :  { %v2059_v1 = vpop.permute.xlu1 %888  ;;  %v2061_v58 = vpop.permute.xlu0 %886  ;;  %v252_v20 = vadd.f32 %v1917_v49, %v237_v50  ;;  %v641_v56 = vadd.f32 %v632_v0, %v627_v2  ;;  %v780_v17 = vadd.f32 %v773_v52, %v766_v23  ;;  %v787_v41 = vsel %vm194_vm2, %v785_v53, %v786_v18 }
 0x163   :  { %v795_v13 = vadd.f32 %v786_v18, %v781_v33  ;;  %v801_v6 = vsel %vm209_vm3, %v799_v26, %v800_v28  ;;  %v813_v31 = vrot.slane %v1984_v36, 5  ;;  %v814_v47 = vrot.slane %v2005_v7, 5 }
 0x164   :  { %v794_v12 = vadd.f32 %v787_v41, %v780_v17  ;;  %v827_v59 = vrot.slane %v1984_v36, 6  ;;  %v828_v43 = vrot.slane %v2005_v7, 6  ;;  %v2077_v25 = vmul.f32 0.020408163, %v253_v9 }
 0x165   :  { %v809_v49 = vadd.f32 %v800_v28, %v795_v13  ;;  %v2079_v0 = vmul.f32 0.020408163, %v445_v62  ;;  %v2081_v50 = vmul.f32 0.020408163, %v252_v20  ;;  %v815_v16 = vsel %vm224_vm4, %v813_v31, %v814_v47 }
 0x166   :  { %v901_v8 = vpop.permute.xlu1 %900  ;;  %v899_v10 = vpop.permute.xlu0 %898  ;;  %v808_v21 = vadd.f32 %v801_v6, %v794_v12  ;;  %v2085_v32 = vmul.f32 0.020408163, %v1886_v14  ;;  %v645_v48 = vmul.f32 0.020408163, %v641_v56  ;;  %v829_v36 = vsel %vm239_vm5, %v827_v59, %v828_v43 }
 0x167   :  { %v823_v2 = vadd.f32 %v814_v47, %v809_v49  ;;  %v644_v7 = vmul.f32 0.020408163, %v640_v61  ;;  %v2090_v53 = vmul.f32 %v2077_v25, %v2077_v25  ;;  %v2094_v52 = vmul.f32 %v2081_v50, %v2081_v50 }
 0x168   :  { %v822_v37 = vadd.f32 %v815_v16, %v808_v21  ;;  %v2098_v14 = vmul.f32 %v2079_v0, %v2079_v0  ;;  %v2102_v61 = vmul.f32 %v2085_v32, %v2085_v32  ;;  %v863_v26 = vadd.f32 %v1980_v30, %v1601_v45 }
 0x169   :  { %v837_v23 = vadd.f32 %v828_v43, %v823_v2  ;;  %v1045_v33 = vsub.f32 %v645_v48, %v2090_v53  ;;  %v862_v28 = vadd.f32 %v1982_v34, %v1605_v46  ;;  %v1044_v20 = vsub.f32 %v644_v7, %v2094_v52 }
 0x16a   :  { %v905_v3 = vpop.permute.xlu1 %904  ;;  %v903_v60 = vpop.permute.xlu0 %902  ;;  %v836_v18 = vadd.f32 %v829_v36, %v822_v37  ;;  %v879_v13 = vadd.f32 %v2012_v55, %v863_v26  ;;  %v865_v12 = vadd.f32 %v1990_v54, %v1617_v4  ;;  %v864_v45 = vadd.f32 %v1992_v27, %v1621_v5 }
 0x16b   :  { %v841_v9 = vmul.f32 0.020408163, %v837_v23  ;;  %v878_v6 = vadd.f32 %v2014_v39, %v862_v28  ;;  %v1049_v46 = vmul.f32 1.0208334, %v1045_v33  ;;  %v1048_v59 = vmul.f32 1.0208334, %v1044_v20 }
 0x16c   :  { %v840_v62 = vmul.f32 0.020408163, %v836_v18  ;;  %v895_v34 = vadd.f32 %v2040_v40, %v879_v13  ;;  %v881_v55 = vadd.f32 %v2026_v11, %v865_v12  ;;  %v880_v16 = vadd.f32 %v2028_v38, %v864_v45 }
 0x16d   :  { %v1057_v41 = vsub.f32 %v841_v9, %v2098_v14  ;;  %v894_v47 = vadd.f32 %v2042_v57, %v878_v6 }
 0x16e   :  { %v917_v56 = vpop.permute.xlu1 %916  ;;  %v915_v17 = vpop.permute.xlu0 %914  ;;  %v1056_v31 = vsub.f32 %v840_v62, %v2102_v61  ;;  %v911_v4 = vadd.f32 %v901_v8, %v895_v34  ;;  %v897_v5 = vadd.f32 %v2059_v1, %v881_v55  ;;  %v896_v27 = vadd.f32 %v2061_v58, %v880_v16 }
 0x16f   :  { %v1061_v30 = vmul.f32 1.0208334, %v1057_v41  ;;  %v910_v54 = vadd.f32 %v899_v10, %v894_v47 }
 0x170   :  { %v1060_v43 = vmul.f32 1.0208334, %v1056_v31  ;;  %v927_v40 = vadd.f32 %v917_v56, %v911_v4  ;;  %v913_v2 = vadd.f32 %v905_v3, %v897_v5  ;;  %v912_v11 = vadd.f32 %v903_v60, %v896_v27 }
 0x171   :  { %v2121_v21 = vadd.f32 %v1061_v30, %v1049_v46  ;;  %v926_v57 = vadd.f32 %v915_v17, %v910_v54 }
 0x172   :  { %v921_v49 = vpop.permute.xlu1 %920  ;;  %v919_v39 = vpop.permute.xlu0 %918  ;;  %v2124_v48 = vadd.f32 %v1060_v43, %v1048_v59 }
 0x173   :  { %v929_v18 = vadd.f32 %v921_v49, %v913_v2  ;;  %v928_v9 = vadd.f32 %v919_v39, %v912_v11 }
 0x176   :  { %v933_v36 = vpop.permute.xlu1 %932  ;;  %v931_v7 = vpop.permute.xlu0 %930 }
 0x177   :  { %v943_v37 = vadd.f32 %v933_v36, %v927_v40  ;;  %v942_v23 = vadd.f32 %v931_v7, %v926_v57 }
 0x179   :  { %v950_v33 = vrot.slane %v942_v23, 1  ;;  %v951_v38 = vrot.slane %v943_v37, 1  ;;  %v965_v8 = vrot.slane %v943_v37, 2  ;;  %v979_v28 = vrot.slane %v943_v37, 3 }
 0x17a   :  { %v937_v10 = vpop.permute.xlu1 %936  ;;  %v935_v26 = vpop.permute.xlu0 %934  ;;  %v993_v62 = vrot.slane %v943_v37, 4  ;;  %v964_v1 = vrot.slane %v942_v23, 2  ;;  %v1007_v60 = vrot.slane %v943_v37, 5  ;;  %v978_v41 = vrot.slane %v942_v23, 3 }
 0x17b   :  { %v2128_v20 = vadd.f32 %v937_v10, %v929_v18  ;;  %v2130_v58 = vadd.f32 %v935_v26, %v928_v9  ;;  %v961_v3 = vadd.f32 %v951_v38, %v943_v37  ;;  %v952_v56 = vsel %vm164_vm0, %v950_v33, %v951_v38 }
 0x17c   :  { %v960_v17 = vadd.f32 %v952_v56, %v942_v23  ;;  %v992_v13 = vrot.slane %v942_v23, 4  ;;  %v1021_v12 = vrot.slane %v943_v37, 6  ;;  %v966_v45 = vsel %vm179_vm1, %v964_v1, %v965_v8 }
 0x17d   :  { %v953_v6 = vrot.slane %v2130_v58, 1  ;;  %v975_v31 = vadd.f32 %v965_v8, %v961_v3  ;;  %v1006_v30 = vrot.slane %v942_v23, 5  ;;  %v1020_v34 = vrot.slane %v942_v23, 6 }
 0x17e   :  { %v974_v46 = vadd.f32 %v966_v45, %v960_v17  ;;  %v954_v47 = vrot.slane %v2128_v20, 1  ;;  %v980_v43 = vsel %vm194_vm2, %v978_v41, %v979_v28  ;;  %v994_v55 = vsel %vm209_vm3, %v992_v13, %v993_v62 }
 0x17f   :  { %v989_v59 = vadd.f32 %v979_v28, %v975_v31  ;;  %v967_v49 = vrot.slane %v2130_v58, 2  ;;  %v968_v54 = vrot.slane %v2128_v20, 2  ;;  %v981_v40 = vrot.slane %v2130_v58, 3 }
 0x180   :  { %v988_v39 = vadd.f32 %v980_v43, %v974_v46  ;;  %v955_v16 = vsel %vm164_vm0, %v953_v6, %v954_v47  ;;  %v963_v4 = vadd.f32 %v954_v47, %v2128_v20  ;;  %v982_v57 = vrot.slane %v2128_v20, 3 }
 0x181   :  { %v1003_v5 = vadd.f32 %v993_v62, %v989_v59  ;;  %v962_v27 = vadd.f32 %v955_v16, %v2130_v58  ;;  %v969_v36 = vsel %vm179_vm1, %v967_v49, %v968_v54  ;;  %v995_v11 = vrot.slane %v2130_v58, 4 }
 0x182   :  { %v1002_v2 = vadd.f32 %v994_v55, %v988_v39  ;;  %v977_v7 = vadd.f32 %v968_v54, %v963_v4  ;;  %v1008_v23 = vsel %vm224_vm4, %v1006_v30, %v1007_v60  ;;  %v996_v9 = vrot.slane %v2128_v20, 4 }
 0x183   :  { %v1017_v37 = vadd.f32 %v1007_v60, %v1003_v5  ;;  %v976_v18 = vadd.f32 %v969_v36, %v962_v27  ;;  %v1022_v38 = vsel %vm239_vm5, %v1020_v34, %v1021_v12  ;;  %v983_v8 = vsel %vm194_vm2, %v981_v40, %v982_v57 }
 0x184   :  { %v1016_v33 = vadd.f32 %v1008_v23, %v1002_v2  ;;  %v991_v10 = vadd.f32 %v982_v57, %v977_v7  ;;  %v1009_v62 = vrot.slane %v2130_v58, 5  ;;  %v1010_v1 = vrot.slane %v2128_v20, 5 }
 0x185   :  { %v1031_v26 = vadd.f32 %v1021_v12, %v1017_v37  ;;  %v990_v28 = vadd.f32 %v983_v8, %v976_v18  ;;  %v997_v56 = vsel %vm209_vm3, %v995_v11, %v996_v9  ;;  %v1133_v60 = vadd.f32 %v2098_v14, %v2090_v53 }
 0x186   :  { %v1030_v3 = vadd.f32 %v1022_v38, %v1016_v33  ;;  %v1005_v17 = vadd.f32 %v996_v9, %v991_v10  ;;  %v1132_v12 = vadd.f32 %v2102_v61, %v2094_v52  ;;  %v1130_v45 = vadd.f32 %v1996_v19, %v1927_v24 }
 0x187   :  { %v2156_v41 = vpop.permute.xlu1 %1097  ;;  %v2158_v13 = vpop.permute.xlu0 %1093  ;;  %v1035_v6 = vmul.f32 0.020408163, %v1031_v26  ;;  %v1004_v31 = vadd.f32 %v997_v56, %v990_v28  ;;  %v1023_v46 = vrot.slane %v2130_v58, 6  ;;  %v1024_v30 = vrot.slane %v2128_v20, 6 }
 0x188   :  { %v1131_v34 = vadd.f32 %v2002_v22, %v1933_v51  ;;  %v1062_v53 = vmul.f32 %v1966_v42, %v1892_v29  ;;  %v1063_v14 = vmul.f32 %v1969_v35, %v1894_v15  ;;  %v1011_v47 = vsel %vm224_vm4, %v1009_v62, %v1010_v1 }
 0x189   :  { %v1136_v52 = vadd.f32 %v1132_v12, %v2156_v41  ;;  %v1034_v61 = vmul.f32 0.020408163, %v1030_v3  ;;  %v1018_v59 = vadd.f32 %v1011_v47, %v1004_v31  ;;  %v1019_v24 = vadd.f32 %v1010_v1, %v1005_v17 }
 0x18a   :  { %v1137_v19 = vadd.f32 %v1133_v60, %v2156_v41  ;;  %v1134_v20 = vadd.f32 %v1130_v45, %v2158_v13  ;;  %v1135_v58 = vadd.f32 %v1131_v34, %v2158_v13  ;;  %v1067_v22 = vsub.f32 %v1035_v6, %v1063_v14 }
 0x18b   :  { %v1120_v51 = vpop.permute.xlu1 %1119  ;;  %v1124_v43 = vpop.permute.xlu0 %1123  ;;  %v1066_v55 = vsub.f32 %v1034_v61, %v1062_v53  ;;  %v1025_v16 = vsel %vm239_vm5, %v1023_v46, %v1024_v30  ;;  %v1033_v54 = vadd.f32 %v1024_v30, %v1019_v24  ;;  %v1064_v2 = vmul.f32 %v2085_v32, %v2081_v50 }
 0x18c   :  { %v1142_v49 = vadd.f32 %v2051_v63, %v1120_v51  ;;  %v1143_v39 = vadd.f32 %v2036_v44, %v1120_v51  ;;  %v1032_v4 = vadd.f32 %v1025_v16, %v1018_v59  ;;  %v1144_v5 = vadd.f32 %v2124_v48, %v1124_v43 }
 0x18d   :  { %v1145_v27 = vadd.f32 %v2121_v21, %v1124_v43  ;;  %v1065_v36 = vmul.f32 %v2079_v0, %v2077_v25  ;;  %v1037_v63 = vmul.f32 0.020408163, %v1033_v54  ;;  %v1070_v37 = vmul.f32 1.0208334, %v1066_v55 }
 0x18e   :  { %v1150_v40 = vmul.f32 %v1142_v49, %v1134_v20  ;;  %v1151_v57 = vmul.f32 %v1143_v39, %v1135_v58  ;;  %v1036_v7 = vmul.f32 0.020408163, %v1032_v4  ;;  %v1152_v11 = vmul.f32 %v1144_v5, %v1136_v52 }
 0x18f   :  { %v1153_v44 = vmul.f32 %v1145_v27, %v1137_v19  ;;  %v1071_v23 = vmul.f32 1.0208334, %v1067_v22  ;;  %v1069_v48 = vsub.f32 %v1037_v63, %v1065_v36  ;;  %v1104_v33 = vmul.f32 2.0, %v1070_v37 }
 0x190   :  { %1214 = vrcp.f32 %v1150_v40  ;;  %v1068_v18 = vsub.f32 %v1036_v7, %v1064_v2  ;;  %v1074_v8 = vmul.f32 2.0, %v1892_v29  ;;  %v1075_v26 = vmul.f32 2.0, %v1894_v15 }
 0x191   :  { %1216 = vrcp.f32 %v1151_v57  ;;  %v1073_v9 = vmul.f32 1.0208334, %v1069_v48  ;;  %v1105_v38 = vmul.f32 2.0, %v1071_v23  ;;  %v1076_v62 = vmul.f32 2.0, %v2081_v50 }
 0x192   :  { %1218 = vrcp.f32 %v1152_v11  ;;  %v1072_v21 = vmul.f32 1.0208334, %v1068_v18  ;;  %v1078_v1 = vmul.f32 %v1074_v8, %v1966_v42  ;;  %v1126_v3 = vadd.f32 %v1120_v51, %v1104_v33 }
 0x193   :  { %1220 = vrcp.f32 %v1153_v44  ;;  %v1107_v28 = vmul.f32 2.0, %v1073_v9  ;;  %v1077_v56 = vmul.f32 2.0, %v2077_v25  ;;  %v1079_v17 = vmul.f32 %v1075_v26, %v1969_v35 }
 0x194   :  { %v1106_v10 = vmul.f32 2.0, %v1072_v21  ;;  %v1127_v60 = vadd.f32 %v1120_v51, %v1105_v38  ;;  %v1080_v6 = vmul.f32 %v1076_v62, %v2085_v32  ;;  %v1100_v31 = vadd.f32 %v2158_v13, %v1078_v1 }
 0x195   :  { %v1081_v29 = vmul.f32 %v1077_v56, %v2079_v0  ;;  %v1101_v15 = vadd.f32 %v2158_v13, %v1079_v17  ;;  %v1129_v45 = vadd.f32 %v1124_v43, %v1107_v28 }
 0x196   :  { %v1128_v12 = vadd.f32 %v1124_v43, %v1106_v10  ;;  %v1102_v50 = vadd.f32 %v2156_v41, %v1080_v6  ;;  %v1146_v46 = vmul.f32 %v1126_v3, %v1100_v31 }
 0x197   :  { %v1103_v30 = vadd.f32 %v2156_v41, %v1081_v29  ;;  %v1147_v25 = vmul.f32 %v1127_v60, %v1101_v15 }
 0x198   :  { %v1148_v53 = vmul.f32 %v1128_v12, %v1102_v50 }
 0x199   :  { %v1149_v47 = vmul.f32 %v1129_v45, %v1103_v30 }
 0x19d   :  { %v1215_v42 = vpop.eup %1214 }
 0x19e   :  { %v1217_v34 = vpop.eup %1216  ;;  %v1155_v35 = vmul.f32 %v1215_v42, %v1146_v46 }
 0x19f   :  { %v1219_v32 = vpop.eup %1218  ;;  %v1157_v14 = vmul.f32 %v1217_v34, %v1147_v25 }
 0x1a0   :  { %v1221_v52 = vpop.eup %1220  ;;  %v1159_v61 = vmul.f32 %v1219_v32, %v1148_v53  ;;  %v1163_v19 = vsel %vm1162_vm7, %v1155_v35, 0.0 }
 0x1a1   :  { %v1167_v0 = vsel %vm1166_vm6, %v1157_v14, 0.0  ;;  %v1161_v59 = vmul.f32 %v1221_v52, %v1149_v47 }
 0x1a2   :  { %1168 = vadd.xlane.f32.xlu1 %v1167_v0  ;;  %v1170_v24 = vsel %vm1162_vm7, %v1159_v61, 0.0 }
 0x1a3   :  { %v1173_v13 = vsel %vm1166_vm6, %v1161_v59, 0.0 }
 0x1a4   :  { %1174 = vadd.xlane.f32.xlu0 %v1173_v13 }
 0x1a6   :  { %1171 = vadd.xlane.f32.xlu1 %v1170_v24 }
 0x1a8   :  { %1164 = vadd.xlane.f32.xlu0 %v1163_v19 }
 0x22b   :  { %v1169_v41 = vpop.xlane.xlu1 %1168 }
 0x22c   :  { %v1176_v43 = vsel %vm239_vm5, %v1169_v41, 0.0 }
 0x22d   :  { %v1175_v20 = vpop.xlane.xlu0 %1174 }
 0x22e   :  { %v1184_v58 = vsel %vm239_vm5, %v1175_v20, 0.0 }
 0x22f   :  { %v1172_v51 = vpop.xlane.xlu1 %1171 }
 0x230   :  { %v1185_v22 = vadd.f32 %v1184_v58, %v1172_v51 }
 0x231   :  { %v1165_v55 = vpop.xlane.xlu0 %1164 }
 0x232   :  { %v1177_v49 = vadd.f32 %v1176_v43, %v1165_v55  ;;  %v1186_v39 = vrot.slane %v1185_v22, 4 }
 0x234   :  { %v1178_v16 = vrot.slane %v1177_v49, 4  ;;  %v1187_v4 = vadd.f32 %v1186_v39, %v1185_v22 }
 0x236   :  { %v1179_v54 = vadd.f32 %v1178_v16, %v1177_v49  ;;  %v1188_v5 = vrot.slane %v1187_v4, 2 }
 0x238   :  { %v1180_v27 = vrot.slane %v1179_v54, 2  ;;  %v1189_v40 = vadd.f32 %v1188_v5, %v1187_v4 }
 0x23a   :  { %v1181_v57 = vadd.f32 %v1180_v27, %v1179_v54  ;;  %v1190_v2 = vrot.slane %v1189_v40, 1 }
 0x23c   :  { %v1182_v36 = vrot.slane %v1181_v57, 1  ;;  %v1191_v7 = vadd.f32 %v1190_v2, %v1189_v40 }
 0x23e   :  { %v1183_v63 = vadd.f32 %v1182_v36, %v1181_v57  ;;  %1194 = vst.msk [vmem:[%s2209_s3 + $0x1] sm:$0x1] %vm1192_vm8, %v1191_v7 }
 0x240   :  { %1193 = vst.msk [vmem:[%s2209_s3] sm:$0x1] %vm1192_vm8, %v1183_v63 }
 0x241   :  { %1199 = vsyncpa [#allocation3], 1 }
 0x242   :  { %1200 = vsyncpa [#allocation5], 1 }

</bundles_post_ra>
